<compile_context>
chip_gen: v7x
topology: tpu7x:2x2x1
jax: 0.10.0
libtpu: 0.0.40
codegen_flags: <defaults>
</compile_context>

<pallas_src>
import jax
import jax.numpy as jnp
from jax.experimental import pallas as pl
from jax.experimental.pallas import tpu as pltpu

EPS = 1e-3  # BatchNorm2d eps=0.001


def conv1x1_bn_kernel(x_ref, w_ref, gb_ref, o_ref):
    # Grid: (cout_blocks, cin_blocks). Axis 1 (Cin) is the reduction axis.
    # x_ref : [tci, M]    (channels on sublanes, pixels on lanes)
    # w_ref : [tco, tci]  (PyTorch layout, passed straight through)
    # gb_ref: [tco, 2]    (gamma in col 0, beta in col 1)
    # o_ref : [tco, M]    (also used as the f32 accumulator across Cin blocks)
    ci = pl.program_id(1)
    last = pl.num_programs(1) - 1

    partial = jnp.dot(w_ref[...], x_ref[...], preferred_element_type=jnp.float32)

    @pl.when(ci == 0)
    def _():
        o_ref[...] = partial

    @pl.when(ci > 0)
    def _():
        o_ref[...] += partial

    @pl.when(ci == last)
    def _():
        y = o_ref[...]                                              # [tco, M]
        inv_m = 1.0 / y.shape[1]
        mean = jnp.sum(y, axis=1, keepdims=True) * inv_m            # [tco, 1]
        mean_sq = jnp.sum(y * y, axis=1, keepdims=True) * inv_m     # [tco, 1]
        var = jnp.maximum(mean_sq - mean * mean, 0.0)               # biased var
        gb = gb_ref[...]                                            # [tco, 2]
        scale = gb[:, 0:1] * jax.lax.rsqrt(var + EPS)               # [tco, 1]
        shift = gb[:, 1:2] - mean * scale                           # [tco, 1]
        o_ref[...] = y * scale + shift


def _pick_grid(Cout, Cin):
    """Chip-aware grid choice; falls back to the single-tile layout."""
    cout_blocks, cin_blocks = 1, 1
    try:
        kind = jax.devices()[0].device_kind.lower()
    except Exception:
        kind = ""
    if "v7" in kind and Cout % 16 == 0:
        # v7x: 2 TensorCores per chip -> one Cout half per core (parallel axis).
        cout_blocks = 2
    elif "v5" in kind and Cin % 256 == 0:
        # v5e: split the contraction so the MXU overlaps the input DMA.
        cin_blocks = 2
    return cout_blocks, cin_blocks


def conv2d_1x1_batchnorm(x_nchw, weight_oi, gamma, beta):
    """x_nchw: [N, Cin, H, W]; weight_oi: [Cout, Cin]; gamma/beta: [Cout]."""
    N, Cin, H, W = x_nchw.shape
    Cout = weight_oi.shape[0]
    M = N * H * W

    if N == 1:
        x2d = x_nchw.reshape(Cin, M)                  # free reshape, no transpose
    else:
        x2d = jnp.moveaxis(x_nchw, 1, 0).reshape(Cin, M)
    x2d = x2d.astype(jnp.float32)
    w2d = weight_oi.astype(jnp.float32)               # [Cout, Cin]
    gb2d = jnp.stack([gamma, beta], axis=1).astype(jnp.float32)   # [Cout, 2]

    cout_blocks, cin_blocks = _pick_grid(Cout, Cin)
    tco = Cout // cout_blocks
    tci = Cin // cin_blocks

    cost = pl.CostEstimate(
        flops=2 * M * Cin * Cout,
        bytes_accessed=(Cin * M + Cout * Cin + Cout * M + 2 * Cout) * 4,
        transcendentals=Cout,
    )

    out2d = pl.pallas_call(
        conv1x1_bn_kernel,
        out_shape=jax.ShapeDtypeStruct((Cout, M), jnp.float32),
        grid=(cout_blocks, cin_blocks),
        in_specs=[
            pl.BlockSpec((tci, M), lambda co, ci: (ci, 0)),
            pl.BlockSpec((tco, tci), lambda co, ci: (co, ci)),
            pl.BlockSpec((tco, 2), lambda co, ci: (co, 0)),
        ],
        out_specs=pl.BlockSpec((tco, M), lambda co, ci: (co, 0)),
        compiler_params=pltpu.CompilerParams(
            dimension_semantics=("parallel", "arbitrary"),
            vmem_limit_bytes=6 * 1024 * 1024,
        ),
        cost_estimate=cost,
    )(x2d, w2d, gb2d)

    if N == 1:
        return out2d.reshape(N, Cout, H, W)           # free reshape back to NCHW
    return jnp.moveaxis(out2d.reshape(Cout, N, H, W), 0, 1)


def _reference(x_nchw, weight_oi, gamma, beta):
    """Pure-JAX reference of Conv2d(1x1, no bias) + training-mode BatchNorm2d."""
    y = jnp.einsum("nchw,oc->nohw", x_nchw, weight_oi)
    mean = jnp.mean(y, axis=(0, 2, 3), keepdims=True)
    var = jnp.mean((y - mean) ** 2, axis=(0, 2, 3), keepdims=True)
    xhat = (y - mean) * jax.lax.rsqrt(var + EPS)
    return xhat * gamma[None, :, None, None] + beta[None, :, None, None]


if __name__ == "__main__":
    # Shapes implied by the module's forward: x238 = [1, 768, 14, 14]
    N, Cin, H, W = 1, 768, 14, 14
    Cout = 128

    key = jax.random.PRNGKey(0)
    kx, kw, kg, kb = jax.random.split(key, 4)

    x = jax.random.normal(kx, (N, Cin, H, W), dtype=jnp.float32)
    # Deterministic parameter init (synthetic; not a checkpoint load)
    weight = jax.random.normal(kw, (Cout, Cin), dtype=jnp.float32) * 0.02
    gamma = 1.0 + 0.1 * jax.random.normal(kg, (Cout,), dtype=jnp.float32)
    beta = 0.1 * jax.random.normal(kb, (Cout,), dtype=jnp.float32)

    out = conv2d_1x1_batchnorm(x, weight, gamma, beta)
    out = jax.block_until_ready(out)

    ref = _reference(x, weight, gamma, beta)
    assert out.shape == (N, Cout, H, W), out.shape
    assert jnp.allclose(out, ref, atol=1e-3, rtol=1e-3), "mismatch vs reference"

    print("KERNEL_OK")
</pallas_src>

<mosaic_0001>
module attributes {stable_mosaic.version = 11 : i64} {
  func.func @conv1x1_bn_kernel(%arg0: i32, %arg1: i32, %arg2: memref<768x196xf32, #tpu.memory_space<vmem>>, %arg3: memref<128x768xf32, #tpu.memory_space<vmem>>, %arg4: memref<128x2xf32, #tpu.memory_space<vmem>>, %arg5: memref<128x196xf32, #tpu.memory_space<vmem>>) attributes {dimension_semantics = [#tpu.dimension_semantics<parallel>, #tpu.dimension_semantics<arbitrary>], iteration_bounds = array<i64: 1, 1>, scalar_prefetch = 0 : i64, scratch_operands = 0 : i64, tpu.core_type = #tpu.core_type<tc>, window_params = [{transform_indices = @transform_0, window_bounds = array<i64: 768, 196>}, {transform_indices = @transform_1, window_bounds = array<i64: 128, 768>}, {transform_indices = @transform_2, window_bounds = array<i64: 128, 2>}, {transform_indices = @transform_3, window_bounds = array<i64: 128, 196>}]} {
    %c0 = arith.constant 0 : index
    %c0_0 = arith.constant 0 : index
    %0 = vector.load %arg3[%c0, %c0_0] : memref<128x768xf32, #tpu.memory_space<vmem>>, vector<128x768xf32>
    %c0_1 = arith.constant 0 : index
    %c0_2 = arith.constant 0 : index
    %1 = vector.load %arg2[%c0_1, %c0_2] : memref<768x196xf32, #tpu.memory_space<vmem>>, vector<768x196xf32>
    %cst = arith.constant dense<0.000000e+00> : vector<128x196xf32>
    %2 = tpu.matmul %0, %1, %cst {dimension_numbers = #tpu.dot_dimension_numbers<[1], [0], [0], [1], [0, 0, 1, 1], [], []>} : vector<128x768xf32>, vector<768x196xf32>, vector<128x196xf32> -> vector<128x196xf32>
    %c0_i32 = arith.constant 0 : i32
    %3 = arith.cmpi eq, %arg1, %c0_i32 : i32
    %4 = arith.extui %3 : i1 to i32
    %c0_i32_3 = arith.constant 0 : i32
    %5 = arith.cmpi ne, %4, %c0_i32_3 : i32
    scf.if %5 {
      %c0_8 = arith.constant 0 : index
      %c0_9 = arith.constant 0 : index
      %12 = vector.load %arg5[%c0_8, %c0_9] : memref<128x196xf32, #tpu.memory_space<vmem>>, vector<128x196xf32>
      tpu.vector_store %arg5[%c0_8, %c0_9], %2 {strides = array<i32>} : memref<128x196xf32, #tpu.memory_space<vmem>>, vector<128x196xf32>,
    } else {
    }
    %c0_i32_4 = arith.constant 0 : i32
    %6 = arith.cmpi sgt, %arg1, %c0_i32_4 : i32
    %7 = arith.extui %6 : i1 to i32
    %c0_i32_5 = arith.constant 0 : i32
    %8 = arith.cmpi ne, %7, %c0_i32_5 : i32
    scf.if %8 {
      %c0_8 = arith.constant 0 : index
      %c0_9 = arith.constant 0 : index
      %12 = vector.load %arg5[%c0_8, %c0_9] : memref<128x196xf32, #tpu.memory_space<vmem>>, vector<128x196xf32>
      %13 = arith.addf %12, %2 : vector<128x196xf32>
      %c0_10 = arith.constant 0 : index
      %c0_11 = arith.constant 0 : index
      %14 = vector.load %arg5[%c0_10, %c0_11] : memref<128x196xf32, #tpu.memory_space<vmem>>, vector<128x196xf32>
      tpu.vector_store %arg5[%c0_10, %c0_11], %13 {strides = array<i32>} : memref<128x196xf32, #tpu.memory_space<vmem>>, vector<128x196xf32>,
    } else {
    }
    %c0_i32_6 = arith.constant 0 : i32
    %9 = arith.cmpi eq, %arg1, %c0_i32_6 : i32
    %10 = arith.extui %9 : i1 to i32
    %c0_i32_7 = arith.constant 0 : i32
    %11 = arith.cmpi ne, %10, %c0_i32_7 : i32
    scf.if %11 {
      %c0_8 = arith.constant 0 : index
      %c0_9 = arith.constant 0 : index
      %12 = vector.load %arg5[%c0_8, %c0_9] : memref<128x196xf32, #tpu.memory_space<vmem>>, vector<128x196xf32>
      %cst_10 = arith.constant dense<0.000000e+00> : vector<128xf32>
      %13 = vector.multi_reduction <add>, %12, %cst_10 [1] : vector<128x196xf32> to vector<128xf32>
      %14 = vector.shape_cast %13 : vector<128xf32> to vector<128x1xf32>
      %cst_11 = arith.constant 0.00510204071 : f32
      %15 = vector.broadcast %cst_11 : f32 to vector<128x1xf32>
      %16 = arith.mulf %14, %15 : vector<128x1xf32>
      %17 = arith.mulf %12, %12 : vector<128x196xf32>
      %cst_12 = arith.constant dense<0.000000e+00> : vector<128xf32>
      %18 = vector.multi_reduction <add>, %17, %cst_12 [1] : vector<128x196xf32> to vector<128xf32>
      %19 = vector.shape_cast %18 : vector<128xf32> to vector<128x1xf32>
      %cst_13 = arith.constant 0.00510204071 : f32
      %20 = vector.broadcast %cst_13 : f32 to vector<128x1xf32>
      %21 = arith.mulf %19, %20 : vector<128x1xf32>
      %22 = arith.mulf %16, %16 : vector<128x1xf32>
      %23 = arith.subf %21, %22 : vector<128x1xf32>
      %cst_14 = arith.constant 0.000000e+00 : f32
      %24 = vector.broadcast %cst_14 : f32 to vector<128x1xf32>
      %25 = arith.maximumf %23, %24 : vector<128x1xf32>
      %c0_15 = arith.constant 0 : index
      %c0_16 = arith.constant 0 : index
      %26 = vector.load %arg4[%c0_15, %c0_16] : memref<128x2xf32, #tpu.memory_space<vmem>>, vector<128x2xf32>
      %27 = vector.extract_strided_slice %26 {offsets = [0, 0], sizes = [128, 1], strides = [1, 1]} : vector<128x2xf32> to vector<128x1xf32>
      %cst_17 = arith.constant 1.000000e-03 : f32
      %28 = vector.broadcast %cst_17 : f32 to vector<128x1xf32>
      %29 = arith.addf %25, %28 : vector<128x1xf32>
      %30 = math.rsqrt %29 : vector<128x1xf32>
      %31 = arith.mulf %27, %30 : vector<128x1xf32>
      %32 = vector.extract_strided_slice %26 {offsets = [0, 1], sizes = [128, 1], strides = [1, 1]} : vector<128x2xf32> to vector<128x1xf32>
      %33 = arith.mulf %16, %31 : vector<128x1xf32>
      %34 = arith.subf %32, %33 : vector<128x1xf32>
      %35 = vector.broadcast %31 : vector<128x1xf32> to vector<128x196xf32>
      %36 = arith.mulf %12, %35 : vector<128x196xf32>
      %37 = vector.broadcast %34 : vector<128x1xf32> to vector<128x196xf32>
      %38 = arith.addf %36, %37 : vector<128x196xf32>
      %c0_18 = arith.constant 0 : index
      %c0_19 = arith.constant 0 : index
      %39 = vector.load %arg5[%c0_18, %c0_19] : memref<128x196xf32, #tpu.memory_space<vmem>>, vector<128x196xf32>
      tpu.vector_store %arg5[%c0_18, %c0_19], %38 {strides = array<i32>} : memref<128x196xf32, #tpu.memory_space<vmem>>, vector<128x196xf32>,
    } else {
    }
    return
  }
  func.func @transform_0(%arg0: i32, %arg1: i32) -> (i32, i32) {
    %c0_i32 = arith.constant 0 : i32
    %c0_i32_0 = arith.constant 0 : i32
    return %arg1, %c0_i32 : i32, i32
  }
  func.func @transform_1(%arg0: i32, %arg1: i32) -> (i32, i32) {
    %c0_i32 = arith.constant 0 : i32
    return %arg0, %arg1 : i32, i32
  }
  func.func @transform_2(%arg0: i32, %arg1: i32) -> (i32, i32) {
    %c0_i32 = arith.constant 0 : i32
    %c0_i32_0 = arith.constant 0 : i32
    return %arg0, %c0_i32 : i32, i32
  }
  func.func @transform_3(%arg0: i32, %arg1: i32) -> (i32, i32) {
    %c0_i32 = arith.constant 0 : i32
    %c0_i32_0 = arith.constant 0 : i32
    return %arg0, %c0_i32 : i32, i32
  }
}

</mosaic_0001>

<bundles_post_ra>
// kernel: tpu_custom_call.1
= control target key start
LH: loop header
LB: loop body
LE: loop exit
PB: predicated region body
PF: predicated region fallthrough
CT: control target
= control target key end

     0   :  { %vm790_vm0 = vcmask 556032   ;;  %s1948_s27 = smov 1   ;;  %s3624_s0 = inlined_call_operand.vmem [shape: f32[768,196], index: 0, kind: input, shape index: {}]   ;;  %s3625_s1 = inlined_call_operand.vmem [shape: f32[128,768], index: 1, kind: input, shape index: {}]   ;;  %s3626_s3 = inlined_call_operand.vmem [shape: f32[128,196], index: 3, kind: output, shape index: {}]   ;;  %s3627_s2 = inlined_call_operand.vmem [shape: f32[128,2], index: 2, kind: input, shape index: {}]  }
   0x1   :  { %v111_v0 = vld [vmem:[%s3624_s0 + $0x8] sm:$0xff]  ;;  %v113_v1 = vld [vmem:[%s3624_s0 + $0x18] sm:$0xff]  ;;  %v110_v5 = vld [vmem:[%s3624_s0] sm:$0xff] }
   0x2   :  { %v175_v2 = vld [vmem:[%s3624_s0 + $0x208] sm:$0xff]  ;;  %v1619_v3 = vpack.c.bf16 %v113_v1, %v111_v0  ;;  %v177_v4 = vld [vmem:[%s3624_s0 + $0x218] sm:$0xff]  ;;  %v112_v6 = vld [vmem:[%s3624_s0 + $0x10] sm:$0xff] }
   0x3   :  { %v1683_v7 = vpack.c.bf16 %v177_v4, %v175_v2  ;;  %v1621_v8 = vpack.c.bf16 %v112_v6, %v110_v5  ;;  %v174_v9 = vld [vmem:[%s3624_s0 + $0x200] sm:$0xff]  ;;  %v176_v10 = vld [vmem:[%s3624_s0 + $0x210] sm:$0xff]  ;;  %v115_v11 = vld [vmem:[%s3624_s0 + $0x28] sm:$0xff] }
   0x4   :  { %1620 = vmatprep.subr.bf16.mxu1 %v1619_v3  ;;  %v1685_v12 = vpack.c.bf16 %v176_v10, %v174_v9  ;;  %v117_v13 = vld [vmem:[%s3624_s0 + $0x38] sm:$0xff]  ;;  %v179_v14 = vld [vmem:[%s3624_s0 + $0x228] sm:$0xff]  ;;  %v114_v18 = vld [vmem:[%s3624_s0 + $0x20] sm:$0xff] }
   0x5   :  { %v181_v15 = vld [vmem:[%s3624_s0 + $0x238] sm:$0xff]  ;;  %1684 = vmatprep.subr.bf16.mxu0 %v1683_v7  ;;  %1622 = vmatpush1.bf16.msra.mxu1 %v1621_v8  ;;  %v1623_v16 = vpack.c.bf16 %v117_v13, %v115_v11  ;;  %v116_v19 = vld [vmem:[%s3624_s0 + $0x30] sm:$0xff]  ;;  %v178_v20 = vld [vmem:[%s3624_s0 + $0x220] sm:$0xff] }
   0x6   :  { %v1687_v17 = vpack.c.bf16 %v181_v15, %v179_v14  ;;  %1686 = vmatpush1.bf16.msra.mxu0 %v1685_v12  ;;  %v1625_v21 = vpack.c.bf16 %v116_v19, %v114_v18  ;;  %v180_v22 = vld [vmem:[%s3624_s0 + $0x230] sm:$0xff]  ;;  %v119_v23 = vld [vmem:[%s3624_s0 + $0x48] sm:$0xff]  ;;  %v121_v24 = vld [vmem:[%s3624_s0 + $0x58] sm:$0xff] }
   0x7   :  { %1624 = vmatprep.subr.bf16.mxu1 %v1623_v16  ;;  %v1689_v25 = vpack.c.bf16 %v180_v22, %v178_v20  ;;  %v1627_v26 = vpack.c.bf16 %v121_v24, %v119_v23  ;;  %v183_v27 = vld [vmem:[%s3624_s0 + $0x248] sm:$0xff]  ;;  %v185_v28 = vld [vmem:[%s3624_s0 + $0x258] sm:$0xff]  ;;  %v118_v29 = vld [vmem:[%s3624_s0 + $0x40] sm:$0xff] }
   0x8   :  { %1688 = vmatprep.subr.bf16.mxu0 %v1687_v17  ;;  %v1691_v30 = vpack.c.bf16 %v185_v28, %v183_v27  ;;  %v120_v31 = vld [vmem:[%s3624_s0 + $0x50] sm:$0xff]  ;;  %v182_v32 = vld [vmem:[%s3624_s0 + $0x240] sm:$0xff]  ;;  %v123_v35 = vld [vmem:[%s3624_s0 + $0x68] sm:$0xff] }
   0x9   :  { %v184_v33 = vld [vmem:[%s3624_s0 + $0x250] sm:$0xff]  ;;  %1626 = vmatpush1.bf16.msra.mxu1 %v1625_v21  ;;  %v1629_v34 = vpack.c.bf16 %v120_v31, %v118_v29  ;;  %v125_v36 = vld [vmem:[%s3624_s0 + $0x78] sm:$0xff]  ;;  %v187_v37 = vld [vmem:[%s3624_s0 + $0x268] sm:$0xff] }
   0xa   :  { %1690 = vmatpush1.bf16.msra.mxu0 %v1689_v25  ;;  %1628 = vmatprep.subr.bf16.mxu1 %v1627_v26  ;;  %v1693_v38 = vpack.c.bf16 %v184_v33, %v182_v32  ;;  %v1631_v39 = vpack.c.bf16 %v125_v36, %v123_v35  ;;  %v189_v40 = vld [vmem:[%s3624_s0 + $0x278] sm:$0xff]  ;;  %v122_v41 = vld [vmem:[%s3624_s0 + $0x60] sm:$0xff]  ;;  %v124_v42 = vld [vmem:[%s3624_s0 + $0x70] sm:$0xff] }
   0xb   :  { %1692 = vmatprep.subr.bf16.mxu0 %v1691_v30  ;;  %v1695_v43 = vpack.c.bf16 %v189_v40, %v187_v37  ;;  %v186_v44 = vld [vmem:[%s3624_s0 + $0x260] sm:$0xff]  ;;  %v188_v45 = vld [vmem:[%s3624_s0 + $0x270] sm:$0xff]  ;;  %v127_v46 = vld [vmem:[%s3624_s0 + $0x88] sm:$0xff]  ;;  %v1633_v50 = vpack.c.bf16 %v124_v42, %v122_v41 }
   0xc   :  { %v129_v47 = vld [vmem:[%s3624_s0 + $0x98] sm:$0xff]  ;;  %v191_v48 = vld [vmem:[%s3624_s0 + $0x288] sm:$0xff]  ;;  %v1697_v51 = vpack.c.bf16 %v188_v45, %v186_v44  ;;  %v126_v53 = vld [vmem:[%s3624_s0 + $0x80] sm:$0xff] }
   0xd   :  { %v193_v49 = vld [vmem:[%s3624_s0 + $0x298] sm:$0xff]  ;;  %1630 = vmatpush1.bf16.msra.mxu1 %v1629_v34  ;;  %v1635_v52 = vpack.c.bf16 %v129_v47, %v127_v46  ;;  %v128_v54 = vld [vmem:[%s3624_s0 + $0x90] sm:$0xff]  ;;  %v190_v55 = vld [vmem:[%s3624_s0 + $0x280] sm:$0xff] }
   0xe   :  { %1694 = vmatpush1.bf16.msra.mxu0 %v1693_v38  ;;  %1632 = vmatprep.subr.bf16.mxu1 %v1631_v39  ;;  %v1699_v56 = vpack.c.bf16 %v193_v49, %v191_v48  ;;  %v192_v57 = vld [vmem:[%s3624_s0 + $0x290] sm:$0xff]  ;;  %v131_v58 = vld [vmem:[%s3624_s0 + $0xa8] sm:$0xff]  ;;  %v133_v59 = vld [vmem:[%s3624_s0 + $0xb8] sm:$0xff]  ;;  %v1637_v62 = vpack.c.bf16 %v128_v54, %v126_v53 }
   0xf   :  { %1696 = vmatprep.subr.bf16.mxu0 %v1695_v43  ;;  %v195_v60 = vld [vmem:[%s3624_s0 + $0x2a8] sm:$0xff]  ;;  %v197_v61 = vld [vmem:[%s3624_s0 + $0x2b8] sm:$0xff]  ;;  %v1701_v63 = vpack.c.bf16 %v192_v57, %v190_v55  ;;  %v1639_v0 = vpack.c.bf16 %v133_v59, %v131_v58  ;;  %v130_v1 = vld [vmem:[%s3624_s0 + $0xa0] sm:$0xff] }
  0x10   :  { %v132_v2 = vld [vmem:[%s3624_s0 + $0xb0] sm:$0xff]  ;;  %v194_v3 = vld [vmem:[%s3624_s0 + $0x2a0] sm:$0xff]  ;;  %v1703_v4 = vpack.c.bf16 %v197_v61, %v195_v60  ;;  %v135_v6 = vld [vmem:[%s3624_s0 + $0xc8] sm:$0xff] }
  0x11   :  { %1634 = vmatpush1.bf16.msra.mxu1 %v1633_v50  ;;  %v196_v5 = vld [vmem:[%s3624_s0 + $0x2b0] sm:$0xff]  ;;  %v137_v7 = vld [vmem:[%s3624_s0 + $0xd8] sm:$0xff]  ;;  %v199_v8 = vld [vmem:[%s3624_s0 + $0x2c8] sm:$0xff]  ;;  %v1641_v10 = vpack.c.bf16 %v132_v2, %v130_v1 }
  0x12   :  { %1698 = vmatpush1.bf16.msra.mxu0 %v1697_v51  ;;  %1636 = vmatprep.subr.bf16.mxu1 %v1635_v52  ;;  %v201_v9 = vld [vmem:[%s3624_s0 + $0x2d8] sm:$0xff]  ;;  %v1705_v11 = vpack.c.bf16 %v196_v5, %v194_v3  ;;  %v1643_v12 = vpack.c.bf16 %v137_v7, %v135_v6  ;;  %v134_v13 = vld [vmem:[%s3624_s0 + $0xc0] sm:$0xff]  ;;  %v136_v14 = vld [vmem:[%s3624_s0 + $0xd0] sm:$0xff] }
  0x13   :  { %1700 = vmatprep.subr.bf16.mxu0 %v1699_v56  ;;  %v198_v15 = vld [vmem:[%s3624_s0 + $0x2c0] sm:$0xff]  ;;  %v1707_v16 = vpack.c.bf16 %v201_v9, %v199_v8  ;;  %v200_v17 = vld [vmem:[%s3624_s0 + $0x2d0] sm:$0xff]  ;;  %v139_v18 = vld [vmem:[%s3624_s0 + $0xe8] sm:$0xff]  ;;  %v1645_v22 = vpack.c.bf16 %v136_v14, %v134_v13 }
  0x14   :  { %v141_v19 = vld [vmem:[%s3624_s0 + $0xf8] sm:$0xff]  ;;  %v203_v20 = vld [vmem:[%s3624_s0 + $0x2e8] sm:$0xff]  ;;  %v1709_v23 = vpack.c.bf16 %v200_v17, %v198_v15  ;;  %v138_v25 = vld [vmem:[%s3624_s0 + $0xe0] sm:$0xff] }
  0x15   :  { %1638 = vmatpush1.bf16.msra.mxu1 %v1637_v62  ;;  %v205_v21 = vld [vmem:[%s3624_s0 + $0x2f8] sm:$0xff]  ;;  %v1647_v24 = vpack.c.bf16 %v141_v19, %v139_v18  ;;  %v140_v26 = vld [vmem:[%s3624_s0 + $0xf0] sm:$0xff]  ;;  %v202_v27 = vld [vmem:[%s3624_s0 + $0x2e0] sm:$0xff] }
  0x16   :  { %1702 = vmatpush1.bf16.msra.mxu0 %v1701_v63  ;;  %1640 = vmatprep.subr.bf16.mxu1 %v1639_v0  ;;  %v1711_v28 = vpack.c.bf16 %v205_v21, %v203_v20  ;;  %v204_v29 = vld [vmem:[%s3624_s0 + $0x2f0] sm:$0xff]  ;;  %v143_v30 = vld [vmem:[%s3624_s0 + $0x108] sm:$0xff]  ;;  %v145_v31 = vld [vmem:[%s3624_s0 + $0x118] sm:$0xff]  ;;  %v1649_v34 = vpack.c.bf16 %v140_v26, %v138_v25 }
  0x17   :  { %1704 = vmatprep.subr.bf16.mxu0 %v1703_v4  ;;  %v207_v32 = vld [vmem:[%s3624_s0 + $0x308] sm:$0xff]  ;;  %v209_v33 = vld [vmem:[%s3624_s0 + $0x318] sm:$0xff]  ;;  %v1713_v35 = vpack.c.bf16 %v204_v29, %v202_v27  ;;  %v1651_v36 = vpack.c.bf16 %v145_v31, %v143_v30  ;;  %v142_v37 = vld [vmem:[%s3624_s0 + $0x100] sm:$0xff] }
  0x18   :  { %v144_v38 = vld [vmem:[%s3624_s0 + $0x110] sm:$0xff]  ;;  %v206_v39 = vld [vmem:[%s3624_s0 + $0x300] sm:$0xff]  ;;  %v1715_v40 = vpack.c.bf16 %v209_v33, %v207_v32  ;;  %v147_v42 = vld [vmem:[%s3624_s0 + $0x128] sm:$0xff] }
  0x19   :  { %1642 = vmatpush1.bf16.msra.mxu1 %v1641_v10  ;;  %v208_v41 = vld [vmem:[%s3624_s0 + $0x310] sm:$0xff]  ;;  %v149_v43 = vld [vmem:[%s3624_s0 + $0x138] sm:$0xff]  ;;  %v211_v44 = vld [vmem:[%s3624_s0 + $0x328] sm:$0xff]  ;;  %v1653_v46 = vpack.c.bf16 %v144_v38, %v142_v37 }
  0x1a   :  { %1706 = vmatpush1.bf16.msra.mxu0 %v1705_v11  ;;  %1644 = vmatprep.subr.bf16.mxu1 %v1643_v12  ;;  %v213_v45 = vld [vmem:[%s3624_s0 + $0x338] sm:$0xff]  ;;  %v1717_v47 = vpack.c.bf16 %v208_v41, %v206_v39  ;;  %v1655_v48 = vpack.c.bf16 %v149_v43, %v147_v42  ;;  %v146_v49 = vld [vmem:[%s3624_s0 + $0x120] sm:$0xff]  ;;  %v148_v50 = vld [vmem:[%s3624_s0 + $0x130] sm:$0xff] }
  0x1b   :  { %1708 = vmatprep.subr.bf16.mxu0 %v1707_v16  ;;  %v210_v51 = vld [vmem:[%s3624_s0 + $0x320] sm:$0xff]  ;;  %v1719_v52 = vpack.c.bf16 %v213_v45, %v211_v44  ;;  %v212_v53 = vld [vmem:[%s3624_s0 + $0x330] sm:$0xff]  ;;  %v151_v54 = vld [vmem:[%s3624_s0 + $0x148] sm:$0xff]  ;;  %v1657_v58 = vpack.c.bf16 %v148_v50, %v146_v49 }
  0x1c   :  { %v153_v55 = vld [vmem:[%s3624_s0 + $0x158] sm:$0xff]  ;;  %v215_v56 = vld [vmem:[%s3624_s0 + $0x348] sm:$0xff]  ;;  %v1721_v59 = vpack.c.bf16 %v212_v53, %v210_v51  ;;  %v150_v61 = vld [vmem:[%s3624_s0 + $0x140] sm:$0xff] }
  0x1d   :  { %1646 = vmatpush1.bf16.msra.mxu1 %v1645_v22  ;;  %v217_v57 = vld [vmem:[%s3624_s0 + $0x358] sm:$0xff]  ;;  %v1659_v60 = vpack.c.bf16 %v153_v55, %v151_v54  ;;  %v152_v62 = vld [vmem:[%s3624_s0 + $0x150] sm:$0xff]  ;;  %v214_v63 = vld [vmem:[%s3624_s0 + $0x340] sm:$0xff] }
  0x1e   :  { %1710 = vmatpush1.bf16.msra.mxu0 %v1709_v23  ;;  %1648 = vmatprep.subr.bf16.mxu1 %v1647_v24  ;;  %v1723_v0 = vpack.c.bf16 %v217_v57, %v215_v56  ;;  %v216_v1 = vld [vmem:[%s3624_s0 + $0x350] sm:$0xff]  ;;  %v155_v2 = vld [vmem:[%s3624_s0 + $0x168] sm:$0xff]  ;;  %v157_v3 = vld [vmem:[%s3624_s0 + $0x178] sm:$0xff]  ;;  %v1661_v6 = vpack.c.bf16 %v152_v62, %v150_v61 }
  0x1f   :  { %1712 = vmatprep.subr.bf16.mxu0 %v1711_v28  ;;  %v219_v4 = vld [vmem:[%s3624_s0 + $0x368] sm:$0xff]  ;;  %v221_v5 = vld [vmem:[%s3624_s0 + $0x378] sm:$0xff]  ;;  %v154_v7 = vld [vmem:[%s3624_s0 + $0x160] sm:$0xff]  ;;  %v1725_v8 = vpack.c.bf16 %v216_v1, %v214_v63  ;;  %v1663_v9 = vpack.c.bf16 %v157_v3, %v155_v2 }
  0x20   :  { %v156_v10 = vld [vmem:[%s3624_s0 + $0x170] sm:$0xff]  ;;  %v218_v11 = vld [vmem:[%s3624_s0 + $0x360] sm:$0xff]  ;;  %v1727_v13 = vpack.c.bf16 %v221_v5, %v219_v4  ;;  %v159_v14 = vld [vmem:[%s3624_s0 + $0x188] sm:$0xff] }
  0x21   :  { %1650 = vmatpush1.bf16.msra.mxu1 %v1649_v34  ;;  %v220_v12 = vld [vmem:[%s3624_s0 + $0x370] sm:$0xff]  ;;  %v161_v15 = vld [vmem:[%s3624_s0 + $0x198] sm:$0xff]  ;;  %v15_v16 = vld [vmem:[%s3625_s1 + $0x8] sm:$0xff]  ;;  %v1665_v20 = vpack.c.bf16 %v156_v10, %v154_v7 }
  0x22   :  { %1714 = vmatpush1.bf16.msra.mxu0 %v1713_v35  ;;  %1652 = vmatprep.subr.bf16.mxu1 %v1651_v36  ;;  %v223_v17 = vld [vmem:[%s3624_s0 + $0x388] sm:$0xff]  ;;  %v225_v18 = vld [vmem:[%s3624_s0 + $0x398] sm:$0xff]  ;;  %v1729_v21 = vpack.c.bf16 %v220_v12, %v218_v11  ;;  %v1667_v22 = vpack.c.bf16 %v161_v15, %v159_v14  ;;  %v158_v23 = vld [vmem:[%s3624_s0 + $0x180] sm:$0xff] }
  0x23   :  { %1716 = vmatprep.subr.bf16.mxu0 %v1715_v40  ;;  %366 = vmatprep.mubr.f32.mxu1 %v15_v16  ;;  %v17_v19 = vld [vmem:[%s3625_s1 + $0x18] sm:$0xff]  ;;  %v160_v24 = vld [vmem:[%s3624_s0 + $0x190] sm:$0xff]  ;;  %v222_v25 = vld [vmem:[%s3624_s0 + $0x380] sm:$0xff]  ;;  %v1731_v26 = vpack.c.bf16 %v225_v18, %v223_v17 }
  0x24   :  { %527 = vmatprep.mubr.f32.mxu0 %v17_v19  ;;  %v224_v27 = vld [vmem:[%s3624_s0 + $0x390] sm:$0xff]  ;;  %v163_v28 = vld [vmem:[%s3624_s0 + $0x1a8] sm:$0xff]  ;;  %v165_v29 = vld [vmem:[%s3624_s0 + $0x1b8] sm:$0xff]  ;;  %v1669_v32 = vpack.c.bf16 %v160_v24, %v158_v23 }
  0x25   :  { %1654 = vmatpush1.bf16.msra.mxu1 %v1653_v46  ;;  %v227_v30 = vld [vmem:[%s3624_s0 + $0x3a8] sm:$0xff]  ;;  %v229_v31 = vld [vmem:[%s3624_s0 + $0x3b8] sm:$0xff]  ;;  %v1733_v33 = vpack.c.bf16 %v224_v27, %v222_v25  ;;  %v1671_v34 = vpack.c.bf16 %v165_v29, %v163_v28  ;;  %v162_v35 = vld [vmem:[%s3624_s0 + $0x1a0] sm:$0xff] }
  0x26   :  { %1718 = vmatpush1.bf16.msra.mxu0 %v1717_v47  ;;  %1656 = vmatprep.subr.bf16.mxu1 %v1655_v48  ;;  %v164_v36 = vld [vmem:[%s3624_s0 + $0x1b0] sm:$0xff]  ;;  %v226_v37 = vld [vmem:[%s3624_s0 + $0x3a0] sm:$0xff]  ;;  %v1735_v38 = vpack.c.bf16 %v229_v31, %v227_v30  ;;  %v167_v40 = vld [vmem:[%s3624_s0 + $0x1c8] sm:$0xff] }
  0x27   :  { %1720 = vmatprep.subr.bf16.mxu0 %v1719_v52  ;;  %v228_v39 = vld [vmem:[%s3624_s0 + $0x3b0] sm:$0xff]  ;;  %v169_v41 = vld [vmem:[%s3624_s0 + $0x1d8] sm:$0xff]  ;;  %v231_v42 = vld [vmem:[%s3624_s0 + $0x3c8] sm:$0xff]  ;;  %v1673_v44 = vpack.c.bf16 %v164_v36, %v162_v35 }
  0x28   :  { %v233_v43 = vld [vmem:[%s3624_s0 + $0x3d8] sm:$0xff]  ;;  %v1737_v45 = vpack.c.bf16 %v228_v39, %v226_v37  ;;  %v1675_v46 = vpack.c.bf16 %v169_v41, %v167_v40  ;;  %v166_v47 = vld [vmem:[%s3624_s0 + $0x1c0] sm:$0xff]  ;;  %v168_v48 = vld [vmem:[%s3624_s0 + $0x1d0] sm:$0xff] }
  0x29   :  { %1658 = vmatpush1.bf16.msra.mxu1 %v1657_v58  ;;  %v230_v49 = vld [vmem:[%s3624_s0 + $0x3c0] sm:$0xff]  ;;  %v1739_v50 = vpack.c.bf16 %v233_v43, %v231_v42  ;;  %v232_v51 = vld [vmem:[%s3624_s0 + $0x3d0] sm:$0xff]  ;;  %v171_v52 = vld [vmem:[%s3624_s0 + $0x1e8] sm:$0xff]  ;;  %v1677_v56 = vpack.c.bf16 %v168_v48, %v166_v47 }
  0x2a   :  { %1722 = vmatpush1.bf16.msra.mxu0 %v1721_v59  ;;  %1660 = vmatprep.subr.bf16.mxu1 %v1659_v60  ;;  %v173_v53 = vld [vmem:[%s3624_s0 + $0x1f8] sm:$0xff]  ;;  %v235_v54 = vld [vmem:[%s3624_s0 + $0x3e8] sm:$0xff]  ;;  %v1741_v57 = vpack.c.bf16 %v232_v51, %v230_v49  ;;  %v170_v59 = vld [vmem:[%s3624_s0 + $0x1e0] sm:$0xff] }
  0x2b   :  { %1724 = vmatprep.subr.bf16.mxu0 %v1723_v0  ;;  %v237_v55 = vld [vmem:[%s3624_s0 + $0x3f8] sm:$0xff]  ;;  %v1679_v58 = vpack.c.bf16 %v173_v53, %v171_v52  ;;  %v172_v60 = vld [vmem:[%s3624_s0 + $0x1f0] sm:$0xff]  ;;  %v234_v61 = vld [vmem:[%s3624_s0 + $0x3e0] sm:$0xff] }
  0x2c   :  { %v1743_v62 = vpack.c.bf16 %v237_v55, %v235_v54  ;;  %v236_v63 = vld [vmem:[%s3624_s0 + $0x3f0] sm:$0xff]  ;;  %v239_v0 = vld [vmem:[%s3624_s0 + $0x408] sm:$0xff]  ;;  %v241_v1 = vld [vmem:[%s3624_s0 + $0x418] sm:$0xff]  ;;  %v1681_v2 = vpack.c.bf16 %v172_v60, %v170_v59 }
  0x2d   :  { %1662 = vmatpush1.bf16.msra.mxu1 %v1661_v6  ;;  %v1745_v3 = vpack.c.bf16 %v236_v63, %v234_v61  ;;  %v1747_v4 = vpack.c.bf16 %v241_v1, %v239_v0  ;;  %v238_v5 = vld [vmem:[%s3624_s0 + $0x400] sm:$0xff]  ;;  %v240_v6 = vld [vmem:[%s3624_s0 + $0x410] sm:$0xff]  ;;  %v243_v7 = vld [vmem:[%s3624_s0 + $0x428] sm:$0xff] }
  0x2e   :  { %1726 = vmatpush1.bf16.msra.mxu0 %v1725_v8  ;;  %1664 = vmatprep.subr.bf16.mxu1 %v1663_v9  ;;  %v245_v8 = vld [vmem:[%s3624_s0 + $0x438] sm:$0xff]  ;;  %v14_v9 = vld [vmem:[%s3625_s1] sm:$0xff]  ;;  %v1749_v10 = vpack.c.bf16 %v240_v6, %v238_v5  ;;  %v16_v11 = vld [vmem:[%s3625_s1 + $0x10] sm:$0xff] }
  0x2f   :  { %1728 = vmatprep.subr.bf16.mxu0 %v1727_v13  ;;  %v242_v12 = vld [vmem:[%s3624_s0 + $0x420] sm:$0xff]  ;;  %v244_v13 = vld [vmem:[%s3624_s0 + $0x430] sm:$0xff]  ;;  %v21_v14 = vld [vmem:[%s3625_s1 + $0x38] sm:$0xff]  ;;  %v1751_v15 = vpack.c.bf16 %v245_v8, %v243_v7 }
  0x30   :  { %v23_v16 = vld [vmem:[%s3625_s1 + $0x48] sm:$0xff]  ;;  %v249_v18 = vld [vmem:[%s3624_s0 + $0x458] sm:$0xff]  ;;  %v20_v19 = vld [vmem:[%s3625_s1 + $0x30] sm:$0xff] }
  0x31   :  { %1666 = vmatpush1.bf16.msra.mxu1 %v1665_v20  ;;  %v247_v17 = vld [vmem:[%s3624_s0 + $0x448] sm:$0xff]  ;;  %v1753_v20 = vpack.c.bf16 %v244_v13, %v242_v12  ;;  %v248_v23 = vld [vmem:[%s3624_s0 + $0x450] sm:$0xff]  ;;  %v253_v28 = vld [vmem:[%s3624_s0 + $0x478] sm:$0xff] }
  0x32   :  { %1730 = vmatpush1.bf16.msra.mxu0 %v1729_v21  ;;  %1668 = vmatprep.subr.bf16.mxu1 %v1667_v22  ;;  %v22_v21 = vld [vmem:[%s3625_s1 + $0x40] sm:$0xff]  ;;  %v27_v24 = vld [vmem:[%s3625_s1 + $0x68] sm:$0xff]  ;;  %v1755_v25 = vpack.c.bf16 %v249_v18, %v247_v17  ;;  %v28_v31 = vld [vmem:[%s3625_s1 + $0x70] sm:$0xff] }
  0x33   :  { %1732 = vmatprep.subr.bf16.mxu0 %v1731_v26  ;;  %v246_v22 = vld [vmem:[%s3624_s0 + $0x440] sm:$0xff]  ;;  %v29_v26 = vld [vmem:[%s3625_s1 + $0x78] sm:$0xff]  ;;  %v251_v27 = vld [vmem:[%s3624_s0 + $0x468] sm:$0xff] }
  0x34   :  { %v26_v29 = vld [vmem:[%s3625_s1 + $0x60] sm:$0xff]  ;;  %v1757_v30 = vpack.c.bf16 %v248_v23, %v246_v22  ;;  %v1759_v35 = vpack.c.bf16 %v253_v28, %v251_v27  ;;  %v35_v36 = vld [vmem:[%s3625_s1 + $0xa8] sm:$0xff]  ;;  %v32_v39 = vld [vmem:[%s3625_s1 + $0x90] sm:$0xff] }
  0x35   :  { %1670 = vmatpush1.bf16.msra.mxu1 %v1669_v32  ;;  %v250_v32 = vld [vmem:[%s3624_s0 + $0x460] sm:$0xff]  ;;  %v255_v37 = vld [vmem:[%s3624_s0 + $0x488] sm:$0xff]  ;;  %v256_v43 = vld [vmem:[%s3624_s0 + $0x490] sm:$0xff] }
  0x36   :  { %1734 = vmatpush1.bf16.msra.mxu0 %v1733_v33  ;;  %1672 = vmatprep.subr.bf16.mxu1 %v1671_v34  ;;  %v252_v33 = vld [vmem:[%s3624_s0 + $0x470] sm:$0xff]  ;;  %v33_v34 = vld [vmem:[%s3625_s1 + $0x98] sm:$0xff]  ;;  %v34_v41 = vld [vmem:[%s3625_s1 + $0xa0] sm:$0xff] }
  0x37   :  { %1736 = vmatprep.subr.bf16.mxu0 %v1735_v38  ;;  %v257_v38 = vld [vmem:[%s3624_s0 + $0x498] sm:$0xff]  ;;  %v1761_v40 = vpack.c.bf16 %v252_v33, %v250_v32  ;;  %v254_v42 = vld [vmem:[%s3624_s0 + $0x480] sm:$0xff]  ;;  %v259_v47 = vld [vmem:[%s3624_s0 + $0x4a8] sm:$0xff] }
  0x38   :  { %v261_v48 = vld [vmem:[%s3624_s0 + $0x4b8] sm:$0xff]  ;;  %v38_v49 = vld [vmem:[%s3625_s1 + $0xc0] sm:$0xff]  ;;  %v40_v51 = vld [vmem:[%s3625_s1 + $0xd0] sm:$0xff] }
  0x39   :  { %1674 = vmatpush1.bf16.msra.mxu1 %v1673_v44  ;;  %v39_v44 = vld [vmem:[%s3625_s1 + $0xc8] sm:$0xff]  ;;  %v258_v52 = vld [vmem:[%s3624_s0 + $0x4a0] sm:$0xff]  ;;  %v260_v53 = vld [vmem:[%s3624_s0 + $0x4b0] sm:$0xff]  ;;  %v1767_v55 = vpack.c.bf16 %v261_v48, %v259_v47 }
  0x3a   :  { %1738 = vmatpush1.bf16.msra.mxu0 %v1737_v45  ;;  %1676 = vmatprep.subr.bf16.mxu1 %v1675_v46  ;;  %v1763_v45 = vpack.c.bf16 %v257_v38, %v255_v37  ;;  %v41_v46 = vld [vmem:[%s3625_s1 + $0xd8] sm:$0xff]  ;;  %v44_v59 = vld [vmem:[%s3625_s1 + $0xf0] sm:$0xff]  ;;  %v1769_v60 = vpack.c.bf16 %v260_v53, %v258_v52  ;;  %v46_v61 = vld [vmem:[%s3625_s1 + $0x100] sm:$0xff] }
  0x3b   :  { %1740 = vmatprep.subr.bf16.mxu0 %v1739_v50  ;;  %v1765_v50 = vpack.c.bf16 %v256_v43, %v254_v42  ;;  %v45_v54 = vld [vmem:[%s3625_s1 + $0xf8] sm:$0xff]  ;;  %v264_v63 = vld [vmem:[%s3624_s0 + $0x4d0] sm:$0xff]  ;;  %v51_v0 = vld [vmem:[%s3625_s1 + $0x128] sm:$0xff] }
  0x3c   :  { %v50_v5 = vld [vmem:[%s3625_s1 + $0x120] sm:$0xff]  ;;  %v52_v7 = vld [vmem:[%s3625_s1 + $0x130] sm:$0xff]  ;;  %v59_v12 = vld [vmem:[%s3625_s1 + $0x168] sm:$0xff] }
  0x3d   :  { %1678 = vmatpush1.bf16.msra.mxu1 %v1677_v56  ;;  %v47_v56 = vld [vmem:[%s3625_s1 + $0x108] sm:$0xff]  ;;  %v266_v8 = vld [vmem:[%s3624_s0 + $0x4e0] sm:$0xff]  ;;  %v65_v22 = vld [vmem:[%s3625_s1 + $0x198] sm:$0xff] }
  0x3e   :  { %1742 = vmatpush1.bf16.msra.mxu0 %v1741_v57  ;;  %1680 = vmatprep.subr.bf16.mxu1 %v1679_v58  ;;  %v263_v57 = vld [vmem:[%s3624_s0 + $0x4c8] sm:$0xff]  ;;  %v265_v58 = vld [vmem:[%s3624_s0 + $0x4d8] sm:$0xff]  ;;  %v58_v17 = vld [vmem:[%s3625_s1 + $0x160] sm:$0xff] }
  0x3f   :  { %1744 = vmatprep.subr.bf16.mxu0 %v1743_v62  ;;  %v262_v62 = vld [vmem:[%s3624_s0 + $0x4c0] sm:$0xff]  ;;  %v1771_v1 = vpack.c.bf16 %v265_v58, %v263_v57  ;;  %v271_v13 = vld [vmem:[%s3624_s0 + $0x508] sm:$0xff]  ;;  %v64_v27 = vld [vmem:[%s3625_s1 + $0x190] sm:$0xff] }
  0x40   :  { %v1773_v6 = vpack.c.bf16 %v264_v63, %v262_v62  ;;  %v270_v18 = vld [vmem:[%s3624_s0 + $0x500] sm:$0xff]  ;;  %v275_v23 = vld [vmem:[%s3624_s0 + $0x528] sm:$0xff]  ;;  %v77_v42 = vld [vmem:[%s3625_s1 + $0x1f8] sm:$0xff] }
  0x41   :  { %1682 = vmatpush1.bf16.msra.mxu1 %v1681_v2  ;;  %v53_v2 = vld [vmem:[%s3625_s1 + $0x138] sm:$0xff]  ;;  %v274_v28 = vld [vmem:[%s3624_s0 + $0x520] sm:$0xff]  ;;  %v71_v32 = vld [vmem:[%s3625_s1 + $0x1c8] sm:$0xff] }
  0x42   :  { %1746 = vmatpush1.bf16.msra.mxu0 %v1745_v3  ;;  %1811 = vmatprep.subr.bf16.mxu1 %v1747_v4  ;;  %v267_v3 = vld [vmem:[%s3624_s0 + $0x4e8] sm:$0xff]  ;;  %v70_v37 = vld [vmem:[%s3625_s1 + $0x1c0] sm:$0xff]  ;;  %v76_v47 = vld [vmem:[%s3625_s1 + $0x1f0] sm:$0xff] }
  0x43   :  { %1748 = vmatprep.subr.bf16.mxu0 %v1747_v4  ;;  %v269_v4 = vld [vmem:[%s3624_s0 + $0x4f8] sm:$0xff]  ;;  %v279_v33 = vld [vmem:[%s3624_s0 + $0x548] sm:$0xff]  ;;  %v278_v38 = vld [vmem:[%s3624_s0 + $0x540] sm:$0xff] }
  0x44   :  { %367 = vmatmul.mubr.f32.vlgmr.msra.gmra.mrb[0].mxu1 %v14_v9  ;;  %v268_v9 = vld [vmem:[%s3624_s0 + $0x4f0] sm:$0xff]  ;;  %v283_v43 = vld [vmem:[%s3624_s0 + $0x568] sm:$0xff]  ;;  %v282_v48 = vld [vmem:[%s3624_s0 + $0x560] sm:$0xff] }
  0x45   :  { %528 = vmatmul.mubr.f32.vlgmr.msra.gmra.mrb[0].mxu0 %v16_v11  ;;  %1827 = vmatpush1.bf16.msra.mxu1 %v1749_v10  ;;  %v1775_v11 = vpack.c.bf16 %v269_v4, %v267_v3  ;;  %v83_v52 = vld [vmem:[%s3625_s1 + $0x228] sm:$0xff]  ;;  %v82_v57 = vld [vmem:[%s3625_s1 + $0x220] sm:$0xff]  ;;  %v89_v62 = vld [vmem:[%s3625_s1 + $0x258] sm:$0xff] }
  0x46   :  { %1750 = vmatpush1.bf16.msra.mxu0 %v1749_v10  ;;  %372 = vmatprep.mubr.f32.mxu1 %v21_v14  ;;  %v57_v10 = vld [vmem:[%s3625_s1 + $0x158] sm:$0xff]  ;;  %v287_v53 = vld [vmem:[%s3624_s0 + $0x588] sm:$0xff]  ;;  %v286_v58 = vld [vmem:[%s3624_s0 + $0x580] sm:$0xff] }
  0x47   :  { %533 = vmatprep.mubr.f32.mxu0 %v23_v16  ;;  %1752 = vmatprep.subr.bf16.mxu0 %v1751_v15  ;;  %v273_v14 = vld [vmem:[%s3624_s0 + $0x518] sm:$0xff]  ;;  %v1777_v16 = vpack.c.bf16 %v268_v9, %v266_v8  ;;  %v291_v63 = vld [vmem:[%s3624_s0 + $0x5a8] sm:$0xff]  ;;  %v88_v3 = vld [vmem:[%s3625_s1 + $0x250] sm:$0xff] }
  0x48   :  { %373 = vmatmul.mubr.f32.gmra.mrb[2].mxu1 %v20_v19  ;;  %1812 = vmatprep.subr.bf16.mxu1 %v1751_v15  ;;  %v56_v15 = vld [vmem:[%s3625_s1 + $0x150] sm:$0xff]  ;;  %v290_v4 = vld [vmem:[%s3624_s0 + $0x5a0] sm:$0xff]  ;;  %v95_v8 = vld [vmem:[%s3625_s1 + $0x288] sm:$0xff] }
  0x49   :  { %534 = vmatmul.mubr.f32.gmra.mrb[2].mxu0 %v22_v21  ;;  %1828 = vmatpush1.bf16.msra.mxu1 %v1753_v20  ;;  %v272_v19 = vld [vmem:[%s3624_s0 + $0x510] sm:$0xff]  ;;  %v1779_v21 = vpack.c.bf16 %v273_v14, %v271_v13  ;;  %v295_v9 = vld [vmem:[%s3624_s0 + $0x5c8] sm:$0xff]  ;;  %v94_v13 = vld [vmem:[%s3625_s1 + $0x280] sm:$0xff] }
  0x4a   :  { %1754 = vmatpush1.bf16.msra.mxu0 %v1753_v20  ;;  %378 = vmatprep.mubr.f32.mxu1 %v27_v24  ;;  %v63_v20 = vld [vmem:[%s3625_s1 + $0x188] sm:$0xff]  ;;  %v277_v24 = vld [vmem:[%s3624_s0 + $0x538] sm:$0xff]  ;;  %v294_v14 = vld [vmem:[%s3624_s0 + $0x5c0] sm:$0xff] }
  0x4b   :  { %539 = vmatprep.mubr.f32.mxu0 %v29_v26  ;;  %1756 = vmatprep.subr.bf16.mxu0 %v1755_v25  ;;  %v1781_v26 = vpack.c.bf16 %v272_v19, %v270_v18  ;;  %v101_v18 = vld [vmem:[%s3625_s1 + $0x2b8] sm:$0xff]  ;;  %v299_v19 = vld [vmem:[%s3624_s0 + $0x5e8] sm:$0xff] }
  0x4c   :  { %379 = vmatmul.mubr.f32.gmra.mrb[4].mxu1 %v26_v29  ;;  %1813 = vmatprep.subr.bf16.mxu1 %v1755_v25  ;;  %v62_v25 = vld [vmem:[%s3625_s1 + $0x180] sm:$0xff]  ;;  %v276_v29 = vld [vmem:[%s3624_s0 + $0x530] sm:$0xff] }
  0x4d   :  { %540 = vmatmul.mubr.f32.gmra.mrb[4].mxu0 %v28_v31  ;;  %1829 = vmatpush1.bf16.msra.mxu1 %v1757_v30  ;;  %v1783_v31 = vpack.c.bf16 %v277_v24, %v275_v23  ;;  %v100_v23 = vld [vmem:[%s3625_s1 + $0x2b0] sm:$0xff]  ;;  %v298_v24 = vld [vmem:[%s3624_s0 + $0x5e0] sm:$0xff] }
  0x4e   :  { %1758 = vmatpush1.bf16.msra.mxu0 %v1757_v30  ;;  %384 = vmatprep.mubr.f32.mxu1 %v33_v34  ;;  %v69_v30 = vld [vmem:[%s3625_s1 + $0x1b8] sm:$0xff] }
  0x4f   :  { %545 = vmatprep.mubr.f32.mxu0 %v35_v36  ;;  %1760 = vmatprep.subr.bf16.mxu0 %v1759_v35  ;;  %v281_v34 = vld [vmem:[%s3624_s0 + $0x558] sm:$0xff]  ;;  %v1785_v36 = vpack.c.bf16 %v276_v29, %v274_v28  ;;  %v107_v28 = vld [vmem:[%s3625_s1 + $0x2e8] sm:$0xff]  ;;  %v104_v29 = vld [vmem:[%s3625_s1 + $0x2d0] sm:$0xff] }
  0x50   :  { %385 = vmatmul.mubr.f32.gmra.mrb[6].mxu1 %v32_v39  ;;  %1814 = vmatprep.subr.bf16.mxu1 %v1759_v35  ;;  %v68_v35 = vld [vmem:[%s3625_s1 + $0x1b0] sm:$0xff] }
  0x51   :  { %546 = vmatmul.mubr.f32.gmra.mrb[6].mxu0 %v34_v41  ;;  %1830 = vmatpush1.bf16.msra.mxu1 %v1761_v40  ;;  %v280_v39 = vld [vmem:[%s3624_s0 + $0x550] sm:$0xff]  ;;  %v1787_v41 = vpack.c.bf16 %v281_v34, %v279_v33  ;;  %v67_v33 = vld [vmem:[%s3625_s1 + $0x1a8] sm:$0xff]  ;;  %v66_v34 = vld [vmem:[%s3625_s1 + $0x1a0] sm:$0xff] }
  0x52   :  { %1762 = vmatpush1.bf16.msra.mxu0 %v1761_v40  ;;  %390 = vmatprep.mubr.f32.mxu1 %v39_v44  ;;  %v75_v40 = vld [vmem:[%s3625_s1 + $0x1e8] sm:$0xff]  ;;  %v285_v44 = vld [vmem:[%s3624_s0 + $0x578] sm:$0xff] }
  0x53   :  { %551 = vmatprep.mubr.f32.mxu0 %v41_v46  ;;  %1764 = vmatprep.subr.bf16.mxu0 %v1763_v45  ;;  %v1789_v46 = vpack.c.bf16 %v280_v39, %v278_v38  ;;  %v72_v38 = vld [vmem:[%s3625_s1 + $0x1d0] sm:$0xff] }
  0x54   :  { %391 = vmatmul.mubr.f32.gmra.mrb[8].mxu1 %v38_v49  ;;  %1815 = vmatprep.subr.bf16.mxu1 %v1763_v45  ;;  %v74_v45 = vld [vmem:[%s3625_s1 + $0x1e0] sm:$0xff]  ;;  %v284_v49 = vld [vmem:[%s3624_s0 + $0x570] sm:$0xff] }
  0x55   :  { %552 = vmatmul.mubr.f32.gmra.mrb[8].mxu0 %v40_v51  ;;  %1831 = vmatpush1.bf16.msra.mxu1 %v1765_v50  ;;  %v1791_v51 = vpack.c.bf16 %v285_v44, %v283_v43  ;;  %v24_v39 = vld [vmem:[%s3625_s1 + $0x50] sm:$0xff]  ;;  %v30_v43 = vld [vmem:[%s3625_s1 + $0x80] sm:$0xff]  ;;  %v85_v44 = vld [vmem:[%s3625_s1 + $0x238] sm:$0xff] }
  0x56   :  { %1766 = vmatpush1.bf16.msra.mxu0 %v1765_v50  ;;  %396 = vmatprep.mubr.f32.mxu1 %v45_v54  ;;  %v81_v50 = vld [vmem:[%s3625_s1 + $0x218] sm:$0xff] }
  0x57   :  { %557 = vmatprep.mubr.f32.mxu0 %v47_v56  ;;  %1768 = vmatprep.subr.bf16.mxu0 %v1767_v55  ;;  %v289_v54 = vld [vmem:[%s3624_s0 + $0x598] sm:$0xff]  ;;  %v1793_v56 = vpack.c.bf16 %v284_v49, %v282_v48  ;;  %v91_v48 = vld [vmem:[%s3625_s1 + $0x268] sm:$0xff] }
  0x58   :  { %397 = vmatmul.mubr.f32.gmra.mrb[10].mxu1 %v44_v59  ;;  %1816 = vmatprep.subr.bf16.mxu1 %v1767_v55  ;;  %v80_v55 = vld [vmem:[%s3625_s1 + $0x210] sm:$0xff]  ;;  %v43_v49 = vld [vmem:[%s3625_s1 + $0xe8] sm:$0xff] }
  0x59   :  { %558 = vmatmul.mubr.f32.gmra.mrb[10].mxu0 %v46_v61  ;;  %1832 = vmatpush1.bf16.msra.mxu1 %v1769_v60  ;;  %v288_v59 = vld [vmem:[%s3624_s0 + $0x590] sm:$0xff]  ;;  %v1795_v61 = vpack.c.bf16 %v289_v54, %v287_v53  ;;  %v49_v53 = vld [vmem:[%s3625_s1 + $0x118] sm:$0xff] }
  0x5a   :  { %1770 = vmatpush1.bf16.msra.mxu0 %v1769_v60  ;;  %402 = vmatprep.mubr.f32.mxu1 %v51_v0  ;;  %v87_v60 = vld [vmem:[%s3625_s1 + $0x248] sm:$0xff]  ;;  %v293_v0 = vld [vmem:[%s3624_s0 + $0x5b8] sm:$0xff]  ;;  %v96_v54 = vld [vmem:[%s3625_s1 + $0x290] sm:$0xff] }
  0x5b   :  { %563 = vmatprep.mubr.f32.mxu0 %v53_v2  ;;  %1772 = vmatprep.subr.bf16.mxu0 %v1771_v1  ;;  %v1797_v2 = vpack.c.bf16 %v288_v59, %v286_v58  ;;  %v102_v58 = vld [vmem:[%s3625_s1 + $0x2c0] sm:$0xff] }
  0x5c   :  { %403 = vmatmul.mubr.f32.gmra.mrb[12].mxu1 %v50_v5  ;;  %1817 = vmatprep.subr.bf16.mxu1 %v1771_v1  ;;  %v86_v1 = vld [vmem:[%s3625_s1 + $0x240] sm:$0xff]  ;;  %v292_v5 = vld [vmem:[%s3624_s0 + $0x5b0] sm:$0xff] }
  0x5d   :  { %564 = vmatmul.mubr.f32.gmra.mrb[12].mxu0 %v52_v7  ;;  %1833 = vmatpush1.bf16.msra.mxu1 %v1773_v6  ;;  %v1799_v7 = vpack.c.bf16 %v293_v0, %v291_v63  ;;  %v54_v59 = vld [vmem:[%s3625_s1 + $0x140] sm:$0xff]  ;;  %v60_v63 = vld [vmem:[%s3625_s1 + $0x170] sm:$0xff] }
  0x5e   :  { %1774 = vmatpush1.bf16.msra.mxu0 %v1773_v6  ;;  %408 = vmatprep.mubr.f32.mxu1 %v57_v10  ;;  %v93_v6 = vld [vmem:[%s3625_s1 + $0x278] sm:$0xff] }
  0x5f   :  { %569 = vmatprep.mubr.f32.mxu0 %v59_v12  ;;  %1776 = vmatprep.subr.bf16.mxu0 %v1775_v11  ;;  %v297_v10 = vld [vmem:[%s3624_s0 + $0x5d8] sm:$0xff]  ;;  %v1801_v12 = vpack.c.bf16 %v292_v5, %v290_v4 }
  0x60   :  { %409 = vmatmul.mubr.f32.gmra.mrb[14].mxu1 %v56_v15  ;;  %1818 = vmatprep.subr.bf16.mxu1 %v1775_v11  ;;  %v92_v11 = vld [vmem:[%s3625_s1 + $0x270] sm:$0xff] }
  0x61   :  { %570 = vmatmul.mubr.f32.gmra.mrb[14].mxu0 %v58_v17  ;;  %1834 = vmatpush1.bf16.msra.mxu1 %v1777_v16  ;;  %v296_v15 = vld [vmem:[%s3624_s0 + $0x5d0] sm:$0xff]  ;;  %v1803_v17 = vpack.c.bf16 %v297_v10, %v295_v9 }
  0x62   :  { %1778 = vmatpush1.bf16.msra.mxu0 %v1777_v16  ;;  %414 = vmatprep.mubr.f32.mxu1 %v63_v20  ;;  %v99_v16 = vld [vmem:[%s3625_s1 + $0x2a8] sm:$0xff]  ;;  %v301_v20 = vld [vmem:[%s3624_s0 + $0x5f8] sm:$0xff] }
  0x63   :  { %575 = vmatprep.mubr.f32.mxu0 %v65_v22  ;;  %1780 = vmatprep.subr.bf16.mxu0 %v1779_v21  ;;  %v1805_v22 = vpack.c.bf16 %v296_v15, %v294_v14 }
  0x64   :  { %415 = vmatmul.mubr.f32.gmra.mrb[16].mxu1 %v62_v25  ;;  %1819 = vmatprep.subr.bf16.mxu1 %v1779_v21  ;;  %v98_v21 = vld [vmem:[%s3625_s1 + $0x2a0] sm:$0xff]  ;;  %v300_v25 = vld [vmem:[%s3624_s0 + $0x5f0] sm:$0xff] }
  0x65   :  { %576 = vmatmul.mubr.f32.gmra.mrb[16].mxu0 %v64_v27  ;;  %1835 = vmatpush1.bf16.msra.mxu1 %v1781_v26  ;;  %v1807_v27 = vpack.c.bf16 %v301_v20, %v299_v19 }
  0x66   :  { %1782 = vmatpush1.bf16.msra.mxu0 %v1781_v26  ;;  %420 = vmatprep.mubr.f32.mxu1 %v69_v30  ;;  %v105_v26 = vld [vmem:[%s3625_s1 + $0x2d8] sm:$0xff]  ;;  %v1809_v30 = vpack.c.bf16 %v300_v25, %v298_v24 }
  0x67   :  { %581 = vmatprep.mubr.f32.mxu0 %v71_v32  ;;  %1784 = vmatprep.subr.bf16.mxu0 %v1783_v31  ;;  %v19_v32 = vld [vmem:[%s3625_s1 + $0x28] sm:$0xff] }
  0x68   :  { %421 = vmatmul.mubr.f32.gmra.mrb[18].mxu1 %v68_v35  ;;  %1820 = vmatprep.subr.bf16.mxu1 %v1783_v31  ;;  %v106_v31 = vld [vmem:[%s3625_s1 + $0x2e0] sm:$0xff] }
  0x69   :  { %582 = vmatmul.mubr.f32.gmra.mrb[18].mxu0 %v70_v37  ;;  %1836 = vmatpush1.bf16.msra.mxu1 %v1785_v36  ;;  %v18_v35 = vld [vmem:[%s3625_s1 + $0x20] sm:$0xff]  ;;  %v25_v37 = vld [vmem:[%s3625_s1 + $0x58] sm:$0xff] }
  0x6a   :  { %1786 = vmatpush1.bf16.msra.mxu0 %v1785_v36  ;;  %426 = vmatprep.mubr.f32.mxu1 %v75_v40  ;;  %v73_v36 = vld [vmem:[%s3625_s1 + $0x1d8] sm:$0xff]  ;;  %v79_v40 = vld [vmem:[%s3625_s1 + $0x208] sm:$0xff] }
  0x6b   :  { %587 = vmatprep.mubr.f32.mxu0 %v77_v42  ;;  %1788 = vmatprep.subr.bf16.mxu0 %v1787_v41  ;;  %v78_v42 = vld [vmem:[%s3625_s1 + $0x200] sm:$0xff] }
  0x6c   :  { %427 = vmatmul.mubr.f32.gmra.mrb[20].mxu1 %v74_v45  ;;  %1821 = vmatprep.subr.bf16.mxu1 %v1787_v41  ;;  %v31_v41 = vld [vmem:[%s3625_s1 + $0x88] sm:$0xff]  ;;  %v37_v45 = vld [vmem:[%s3625_s1 + $0xb8] sm:$0xff] }
  0x6d   :  { %588 = vmatmul.mubr.f32.gmra.mrb[20].mxu0 %v76_v47  ;;  %1837 = vmatpush1.bf16.msra.mxu1 %v1789_v46  ;;  %v36_v47 = vld [vmem:[%s3625_s1 + $0xb0] sm:$0xff] }
  0x6e   :  { %1790 = vmatpush1.bf16.msra.mxu0 %v1789_v46  ;;  %432 = vmatprep.mubr.f32.mxu1 %v81_v50  ;;  %v84_v46 = vld [vmem:[%s3625_s1 + $0x230] sm:$0xff]  ;;  %v90_v50 = vld [vmem:[%s3625_s1 + $0x260] sm:$0xff] }
  0x6f   :  { %593 = vmatprep.mubr.f32.mxu0 %v83_v52  ;;  %1792 = vmatprep.subr.bf16.mxu0 %v1791_v51  ;;  %v97_v52 = vld [vmem:[%s3625_s1 + $0x298] sm:$0xff] }
  0x70   :  { %433 = vmatmul.mubr.f32.gmra.mrb[22].mxu1 %v80_v55  ;;  %1822 = vmatprep.subr.bf16.mxu1 %v1791_v51  ;;  %v42_v51 = vld [vmem:[%s3625_s1 + $0xe0] sm:$0xff]  ;;  %v48_v55 = vld [vmem:[%s3625_s1 + $0x110] sm:$0xff] }
  0x71   :  { %594 = vmatmul.mubr.f32.gmra.mrb[22].mxu0 %v82_v57  ;;  %1838 = vmatpush1.bf16.msra.mxu1 %v1793_v56  ;;  %v55_v57 = vld [vmem:[%s3625_s1 + $0x148] sm:$0xff] }
  0x72   :  { %1794 = vmatpush1.bf16.msra.mxu0 %v1793_v56  ;;  %438 = vmatprep.mubr.f32.mxu1 %v87_v60  ;;  %v103_v56 = vld [vmem:[%s3625_s1 + $0x2c8] sm:$0xff]  ;;  %v109_v60 = vld [vmem:[%s3625_s1 + $0x2f8] sm:$0xff] }
  0x73   :  { %599 = vmatprep.mubr.f32.mxu0 %v89_v62  ;;  %1796 = vmatprep.subr.bf16.mxu0 %v1795_v61  ;;  %v108_v62 = vld [vmem:[%s3625_s1 + $0x2f0] sm:$0xff] }
  0x74   :  { %439 = vmatmul.mubr.f32.gmra.mrb[24].mxu1 %v86_v1  ;;  %1823 = vmatprep.subr.bf16.mxu1 %v1795_v61  ;;  %v61_v61 = vld [vmem:[%s3625_s1 + $0x178] sm:$0xff] }
  0x75   :  { %600 = vmatmul.mubr.f32.gmra.mrb[24].mxu0 %v88_v3  ;;  %1839 = vmatpush1.bf16.msra.mxu1 %v1797_v2 }
  0x76   :  { %1798 = vmatpush1.bf16.msra.mxu0 %v1797_v2  ;;  %444 = vmatprep.mubr.f32.mxu1 %v93_v6 }
  0x77   :  { %605 = vmatprep.mubr.f32.mxu0 %v95_v8  ;;  %1800 = vmatprep.subr.bf16.mxu0 %v1799_v7 }
  0x78   :  { %445 = vmatmul.mubr.f32.gmra.mrb[26].mxu1 %v92_v11  ;;  %1824 = vmatprep.subr.bf16.mxu1 %v1799_v7 }
  0x79   :  { %606 = vmatmul.mubr.f32.gmra.mrb[26].mxu0 %v94_v13  ;;  %1840 = vmatpush1.bf16.msra.mxu1 %v1801_v12 }
  0x7a   :  { %1802 = vmatpush1.bf16.msra.mxu0 %v1801_v12  ;;  %450 = vmatprep.mubr.f32.mxu1 %v99_v16 }
  0x7b   :  { %611 = vmatprep.mubr.f32.mxu0 %v101_v18  ;;  %1804 = vmatprep.subr.bf16.mxu0 %v1803_v17 }
  0x7c   :  { %451 = vmatmul.mubr.f32.gmra.mrb[28].mxu1 %v98_v21  ;;  %1825 = vmatprep.subr.bf16.mxu1 %v1803_v17 }
  0x7d   :  { %612 = vmatmul.mubr.f32.gmra.mrb[28].mxu0 %v100_v23  ;;  %1841 = vmatpush1.bf16.msra.mxu1 %v1805_v22 }
  0x7e   :  { %1806 = vmatpush1.bf16.msra.mxu0 %v1805_v22  ;;  %456 = vmatprep.mubr.f32.mxu1 %v105_v26 }
  0x7f   :  { %617 = vmatprep.mubr.f32.mxu0 %v107_v28  ;;  %1808 = vmatprep.subr.bf16.mxu0 %v1807_v27 }
  0x80   :  { %457 = vmatmul.mubr.f32.gmra.mrb[30].mxu1 %v104_v29  ;;  %1826 = vmatprep.subr.bf16.mxu1 %v1807_v27 }
  0x81   :  { %618 = vmatmul.mubr.f32.gmra.mrb[30].mxu0 %v106_v31  ;;  %1842 = vmatpush1.bf16.msra.mxu1 %v1809_v30 }
  0x82   :  { %1810 = vmatpush1.bf16.msra.mxu0 %v1809_v30  ;;  %688 = vmatprep.mubr.f32.mxu0 %v19_v32 }
  0x83   :  { %736 = vmatprep.mubr.f32.mxu1 %v67_v33 }
  0x84   :  { %737 = vmatmul.mubr.f32.vlgmr.msra.gmra.mrb[32].mxu1 %v66_v34 }
  0x85   :  { %689 = vmatmul.mubr.f32.vlgmr.msra.gmra.mrb[0].mxu0 %v18_v35  ;;  %742 = vmatprep.mubr.f32.mxu1 %v73_v36 }
  0x86   :  { %694 = vmatprep.mubr.f32.mxu0 %v25_v37 }
  0x88   :  { %743 = vmatmul.mubr.f32.gmra.mrb[34].mxu1 %v72_v38 }
  0x89   :  { %695 = vmatmul.mubr.f32.gmra.mrb[2].mxu0 %v24_v39  ;;  %748 = vmatprep.mubr.f32.mxu1 %v79_v40 }
  0x8a   :  { %700 = vmatprep.mubr.f32.mxu0 %v31_v41 }
  0x8c   :  { %749 = vmatmul.mubr.f32.gmra.mrb[36].mxu1 %v78_v42 }
  0x8d   :  { %701 = vmatmul.mubr.f32.gmra.mrb[4].mxu0 %v30_v43  ;;  %754 = vmatprep.mubr.f32.mxu1 %v85_v44 }
  0x8e   :  { %706 = vmatprep.mubr.f32.mxu0 %v37_v45 }
  0x90   :  { %755 = vmatmul.mubr.f32.gmra.mrb[38].mxu1 %v84_v46 }
  0x91   :  { %707 = vmatmul.mubr.f32.gmra.mrb[6].mxu0 %v36_v47  ;;  %760 = vmatprep.mubr.f32.mxu1 %v91_v48 }
  0x92   :  { %712 = vmatprep.mubr.f32.mxu0 %v43_v49 }
  0x94   :  { %761 = vmatmul.mubr.f32.gmra.mrb[40].mxu1 %v90_v50 }
  0x95   :  { %713 = vmatmul.mubr.f32.gmra.mrb[8].mxu0 %v42_v51  ;;  %766 = vmatprep.mubr.f32.mxu1 %v97_v52 }
  0x96   :  { %718 = vmatprep.mubr.f32.mxu0 %v49_v53 }
  0x98   :  { %767 = vmatmul.mubr.f32.gmra.mrb[42].mxu1 %v96_v54 }
  0x99   :  { %719 = vmatmul.mubr.f32.gmra.mrb[10].mxu0 %v48_v55  ;;  %772 = vmatprep.mubr.f32.mxu1 %v103_v56 }
  0x9a   :  { %724 = vmatprep.mubr.f32.mxu0 %v55_v57 }
  0x9c   :  { %773 = vmatmul.mubr.f32.gmra.mrb[44].mxu1 %v102_v58 }
  0x9d   :  { %725 = vmatmul.mubr.f32.gmra.mrb[12].mxu0 %v54_v59  ;;  %778 = vmatprep.mubr.f32.mxu1 %v109_v60 }
  0x9e   :  { %730 = vmatprep.mubr.f32.mxu0 %v61_v61 }
  0xa0   :  { %779 = vmatmul.mubr.f32.gmra.mrb[46].mxu1 %v108_v62 }
  0xa1   :  { %731 = vmatmul.mubr.f32.gmra.mrb[14].mxu0 %v60_v63 }
 0x117   :  { %v2834_v0 = vpop.f32.mrb[0].mxu1 }
 0x118   :  { %v2836_v1 = vpop.f32.mrb[1].mxu1 }
 0x11b   :  { %v2838_v2 = vpop.f32.mrb[2].mxu1 }
 0x11c   :  { %v2840_v3 = vpop.f32.mrb[3].mxu1 }
 0x11f   :  { %v2842_v4 = vpop.f32.mrb[4].mxu1 }
 0x120   :  { %v2844_v5 = vpop.f32.mrb[5].mxu1 }
 0x123   :  { %v2846_v6 = vpop.f32.mrb[6].mxu1 }
 0x124   :  { %v2848_v7 = vpop.f32.mrb[7].mxu1 }
 0x127   :  { %v2850_v8 = vpop.f32.mrb[8].mxu1 }
 0x128   :  { %v2852_v9 = vpop.f32.mrb[9].mxu1 }
 0x12b   :  { %v2854_v10 = vpop.f32.mrb[10].mxu1 }
 0x12c   :  { %v2856_v11 = vpop.f32.mrb[11].mxu1 }
 0x12f   :  { %v2858_v12 = vpop.f32.mrb[12].mxu1 }
 0x130   :  { %v2860_v13 = vpop.f32.mrb[13].mxu1 }
 0x133   :  { %v2862_v14 = vpop.f32.mrb[14].mxu1 }
 0x134   :  { %v2864_v15 = vpop.f32.mrb[15].mxu1 }
 0x137   :  { %v416_v16 = vpop.f32.mrb[16].mxu1 }
 0x138   :  { %v577_v17 = vpop.f32.mrb[16].mxu0  ;;  %v418_v18 = vpop.f32.mrb[17].mxu1 }
 0x139   :  { %v578_v19 = vadd.f32 %v577_v17, %v416_v16  ;;  %v579_v20 = vpop.f32.mrb[17].mxu0 }
 0x13a   :  { %v580_v21 = vadd.f32 %v579_v20, %v418_v18 }
 0x13b   :  { %v422_v22 = vpop.f32.mrb[18].mxu1 }
 0x13c   :  { %v583_v23 = vpop.f32.mrb[18].mxu0  ;;  %v424_v24 = vpop.f32.mrb[19].mxu1 }
 0x13d   :  { %v584_v25 = vadd.f32 %v583_v23, %v422_v22  ;;  %v585_v26 = vpop.f32.mrb[19].mxu0 }
 0x13e   :  { %v586_v27 = vadd.f32 %v585_v26, %v424_v24 }
 0x13f   :  { %v428_v28 = vpop.f32.mrb[20].mxu1 }
 0x140   :  { %v589_v29 = vpop.f32.mrb[20].mxu0  ;;  %v430_v30 = vpop.f32.mrb[21].mxu1 }
 0x141   :  { %v590_v31 = vadd.f32 %v589_v29, %v428_v28  ;;  %v591_v32 = vpop.f32.mrb[21].mxu0 }
 0x142   :  { %v592_v33 = vadd.f32 %v591_v32, %v430_v30 }
 0x143   :  { %v434_v34 = vpop.f32.mrb[22].mxu1 }
 0x144   :  { %v595_v35 = vpop.f32.mrb[22].mxu0  ;;  %v436_v36 = vpop.f32.mrb[23].mxu1 }
 0x145   :  { %v2866_v37 = vadd.f32 %v595_v35, %v434_v34  ;;  %v597_v38 = vpop.f32.mrb[23].mxu0 }
 0x146   :  { %v2868_v39 = vadd.f32 %v597_v38, %v436_v36 }
 0x147   :  { %v440_v40 = vpop.f32.mrb[24].mxu1 }
 0x148   :  { %v601_v41 = vpop.f32.mrb[24].mxu0  ;;  %v442_v42 = vpop.f32.mrb[25].mxu1 }
 0x149   :  { %v2870_v43 = vadd.f32 %v601_v41, %v440_v40  ;;  %v603_v44 = vpop.f32.mrb[25].mxu0 }
 0x14a   :  { %v2872_v45 = vadd.f32 %v603_v44, %v442_v42 }
 0x14b   :  { %v446_v46 = vpop.f32.mrb[26].mxu1 }
 0x14c   :  { %v607_v47 = vpop.f32.mrb[26].mxu0  ;;  %v448_v48 = vpop.f32.mrb[27].mxu1 }
 0x14d   :  { %v2874_v49 = vadd.f32 %v607_v47, %v446_v46  ;;  %v609_v50 = vpop.f32.mrb[27].mxu0 }
 0x14e   :  { %v2876_v51 = vadd.f32 %v609_v50, %v448_v48 }
 0x14f   :  { %v452_v52 = vpop.f32.mrb[28].mxu1 }
 0x150   :  { %v613_v53 = vpop.f32.mrb[28].mxu0  ;;  %v454_v54 = vpop.f32.mrb[29].mxu1 }
 0x151   :  { %v2878_v55 = vadd.f32 %v613_v53, %v452_v52  ;;  %v615_v56 = vpop.f32.mrb[29].mxu0 }
 0x152   :  { %v2880_v57 = vadd.f32 %v615_v56, %v454_v54 }
 0x153   :  { %v458_v58 = vpop.f32.mrb[30].mxu1 }
 0x154   :  { %v619_v59 = vpop.f32.mrb[30].mxu0  ;;  %v460_v60 = vpop.f32.mrb[31].mxu1 }
 0x155   :  { %v2882_v61 = vadd.f32 %v619_v59, %v458_v58  ;;  %v621_v62 = vpop.f32.mrb[31].mxu0 }
 0x156   :  { %v2884_v63 = vadd.f32 %v621_v62, %v460_v60 }
 0x157   :  { %v738_v16 = vpop.f32.mrb[32].mxu1 }
 0x158   :  { %v690_v17 = vpop.f32.mrb[0].mxu0  ;;  %v2886_v18 = vadd.f32 %v738_v16, %v578_v19  ;;  %v740_v20 = vpop.f32.mrb[33].mxu1 }
 0x159   :  { %v2889_v22 = vadd.f32 %v690_v17, %v2834_v0  ;;  %v692_v23 = vpop.f32.mrb[1].mxu0  ;;  %v741_v24 = vadd.f32 %v740_v20, %v580_v21 }
 0x15a   :  { %v1844_v26 = vadd.f32 %v692_v23, %v2836_v1 }
 0x15b   :  { %807 = vst.msk [vmem:[%s3626_s3 + $0x88] sm:$0xff] %vm790_vm0, %v741_v24  ;;  %v744_v28 = vpop.f32.mrb[34].mxu1 }
 0x15c   :  { %791 = vst.msk [vmem:[%s3626_s3 + $0x8] sm:$0xff] %vm790_vm0, %v1844_v26  ;;  %v696_v19 = vpop.f32.mrb[2].mxu0  ;;  %v2900_v29 = vadd.f32 %v744_v28, %v584_v25  ;;  %v746_v0 = vpop.f32.mrb[35].mxu1 }
 0x15d   :  { %v2903_v30 = vadd.f32 %v696_v19, %v2838_v2  ;;  %v698_v21 = vpop.f32.mrb[3].mxu0  ;;  %v747_v1 = vadd.f32 %v746_v0, %v586_v27 }
 0x15e   :  { %v1846_v32 = vadd.f32 %v698_v21, %v2840_v3 }
 0x15f   :  { %809 = vst.msk [vmem:[%s3626_s3 + $0x98] sm:$0xff] %vm790_vm0, %v747_v1  ;;  %v750_v34 = vpop.f32.mrb[36].mxu1  ;;  %v1041_v60 = vmul.f32 %v2903_v30, %v2903_v30 }
 0x160   :  { %793 = vst.msk [vmem:[%s3626_s3 + $0x18] sm:$0xff] %vm790_vm0, %v1846_v32  ;;  %v702_v25 = vpop.f32.mrb[4].mxu0  ;;  %v2914_v35 = vadd.f32 %v750_v34, %v590_v31  ;;  %v752_v2 = vpop.f32.mrb[37].mxu1 }
 0x161   :  { %v2917_v36 = vadd.f32 %v702_v25, %v2842_v4  ;;  %v704_v27 = vpop.f32.mrb[5].mxu0  ;;  %v753_v3 = vadd.f32 %v752_v2, %v592_v33 }
 0x162   :  { %v1848_v38 = vadd.f32 %v704_v27, %v2844_v5  ;;  %v2932_v4 = vld [vmem:[%s3626_s3 + $0x88] sm:$0xff] }
 0x163   :  { %811 = vst.msk [vmem:[%s3626_s3 + $0xa8] sm:$0xff] %vm790_vm0, %v753_v3  ;;  %v756_v40 = vpop.f32.mrb[38].mxu1  ;;  %v2927_v41 = vld [vmem:[%s3626_s3 + $0x8] sm:$0xff]  ;;  %v1056_v19 = vmul.f32 %v2932_v4, %v2932_v4 }
 0x164   :  { %795 = vst.msk [vmem:[%s3626_s3 + $0x28] sm:$0xff] %vm790_vm0, %v1848_v38  ;;  %v708_v5 = vpop.f32.mrb[6].mxu0  ;;  %v2939_v31 = vadd.f32 %v756_v40, %v2866_v37  ;;  %v758_v33 = vpop.f32.mrb[39].mxu1  ;;  %v959_v42 = vsel %vm790_vm0, %v2927_v41, 0.0  ;;  %v991_v37 = vsel %vm790_vm0, %v2932_v4, 0.0  ;;  %v1040_v53 = vmul.f32 %v2927_v41, %v2927_v41 }
 0x165   :  { %v2944_v44 = vadd.f32 %v708_v5, %v2846_v6  ;;  %v710_v46 = vpop.f32.mrb[7].mxu0  ;;  %v759_v47 = vadd.f32 %v758_v33, %v2868_v39  ;;  %v960_v48 = vadd.f32 %v2889_v22, %v959_v42  ;;  %v992_v23 = vadd.f32 %v991_v37, %v2886_v18 }
 0x166   :  { %v1850_v50 = vadd.f32 %v710_v46, %v2848_v7  ;;  %v945_v52 = vld [vmem:[%s3626_s3 + $0x98] sm:$0xff]  ;;  %v1071_v28 = vsel %vm790_vm0, %v1040_v53, 0.0  ;;  %v1057_v38 = vmul.f32 %v2900_v29, %v2900_v29 }
 0x167   :  { %813 = vst.msk [vmem:[%s3626_s3 + $0xb8] sm:$0xff] %vm790_vm0, %v759_v47  ;;  %961 = vadd.xlane.f32.xlu0 %v960_v48  ;;  %v762_v6 = vpop.f32.mrb[40].mxu1  ;;  %v995_v39 = vsel %vm790_vm0, %v945_v52, 0.0  ;;  %v2964_v7 = vld [vmem:[%s3626_s3 + $0x18] sm:$0xff]  ;;  %v1058_v24 = vmul.f32 %v945_v52, %v945_v52 }
 0x168   :  { %797 = vst.msk [vmem:[%s3626_s3 + $0x38] sm:$0xff] %vm790_vm0, %v1850_v50  ;;  %v714_v54 = vpop.f32.mrb[8].mxu0  ;;  %v2971_v56 = vadd.f32 %v762_v6, %v2870_v43  ;;  %v764_v58 = vpop.f32.mrb[41].mxu1  ;;  %v996_v59 = vadd.f32 %v995_v39, %v2900_v29  ;;  %v1042_v62 = vmul.f32 %v2964_v7, %v2964_v7  ;;  %v963_v53 = vsel %vm790_vm0, %v2964_v7, 0.0 }
 0x169   :  { %v2979_v16 = vadd.f32 %v714_v54, %v2850_v8  ;;  %v716_v17 = vpop.f32.mrb[9].mxu0  ;;  %v765_v20 = vadd.f32 %v764_v58, %v2872_v45  ;;  %v1039_v45 = vmul.f32 %v2889_v22, %v2889_v22  ;;  %v1107_v27 = vsel %vm790_vm0, %v1058_v24, 0.0 }
 0x16a   :  { %v1852_v43 = vadd.f32 %v716_v17, %v2852_v9  ;;  %997 = vadd.xlane.f32.xlu1 %v996_v59  ;;  %v1075_v26 = vsel %vm790_vm0, %v1042_v62, 0.0  ;;  %v1108_v42 = vadd.f32 %v1107_v27, %v1057_v38  ;;  %v964_v62 = vadd.f32 %v2903_v30, %v963_v53 }
 0x16b   :  { %815 = vst.msk [vmem:[%s3626_s3 + $0xc8] sm:$0xff] %vm790_vm0, %v765_v20  ;;  %993 = vadd.xlane.f32.xlu0 %v992_v23  ;;  %v768_v8 = vpop.f32.mrb[42].mxu1  ;;  %v1076_v1 = vadd.f32 %v1075_v26, %v1041_v60  ;;  %v1072_v2 = vadd.f32 %v1071_v28, %v1039_v45  ;;  %v3013_v40 = vld [vmem:[%s3626_s3 + $0x28] sm:$0xff] }
 0x16c   :  { %799 = vst.msk [vmem:[%s3626_s3 + $0x48] sm:$0xff] %vm790_vm0, %v1852_v43  ;;  %v720_v9 = vpop.f32.mrb[10].mxu0  ;;  %v2999_v0 = vadd.f32 %v768_v8, %v2874_v49  ;;  %v770_v21 = vpop.f32.mrb[43].mxu1  ;;  %v1103_v49 = vsel %vm790_vm0, %v1056_v19, 0.0  ;;  %v967_v52 = vsel %vm790_vm0, %v3013_v40, 0.0  ;;  %v1043_v19 = vmul.f32 %v2917_v36, %v2917_v36 }
 0x16d   :  { %v3002_v32 = vadd.f32 %v720_v9, %v2854_v10  ;;  %v722_v34 = vpop.f32.mrb[11].mxu0  ;;  %v771_v25 = vadd.f32 %v770_v21, %v2876_v51  ;;  %v968_v54 = vadd.f32 %v2917_v36, %v967_v52 }
 0x16e   :  { %3638 = vst [vmem:[#allocation2_spill] sm:$0xff] %v2999_v0  ;;  %v1854_v3 = vadd.f32 %v722_v34, %v2856_v11  ;;  %1077 = vadd.xlane.f32.xlu1 %v1076_v1  ;;  %v1055_v11 = vmul.f32 %v2886_v18, %v2886_v18  ;;  %v3072_v23 = vld [vmem:[%s3626_s3 + $0xb8] sm:$0xff]  ;;  %v1045_v1 = vmul.f32 %v2944_v44, %v2944_v44 }
 0x16f   :  { %3639 = vst [vmem:[#allocation3_spill] sm:$0xff] %v3002_v32  ;;  %817 = vst.msk [vmem:[%s3626_s3 + $0xd8] sm:$0xff] %vm790_vm0, %v771_v25  ;;  %1073 = vadd.xlane.f32.xlu0 %v1072_v2  ;;  %v774_v10 = vpop.f32.mrb[44].mxu1  ;;  %v1003_v24 = vsel %vm790_vm0, %v3072_v23, 0.0  ;;  %v1062_v21 = vmul.f32 %v3072_v23, %v3072_v23  ;;  %v1059_v25 = vmul.f32 %v2914_v35, %v2914_v35 }
 0x170   :  { %801 = vst.msk [vmem:[%s3626_s3 + $0x58] sm:$0xff] %vm790_vm0, %v1854_v3  ;;  %v726_v51 = vpop.f32.mrb[12].mxu0  ;;  %v3026_v5 = vadd.f32 %v774_v10, %v2878_v55  ;;  %v776_v33 = vpop.f32.mrb[45].mxu1  ;;  %v1104_v50 = vadd.f32 %v1103_v49, %v1055_v11  ;;  %v3040_v55 = vld [vmem:[%s3626_s3 + $0x38] sm:$0xff]  ;;  %v1004_v8 = vadd.f32 %v1003_v24, %v2939_v31  ;;  %v1061_v49 = vmul.f32 %v2939_v31, %v2939_v31 }
 0x171   :  { %v3029_v46 = vadd.f32 %v726_v51, %v2858_v12  ;;  %v728_v47 = vpop.f32.mrb[13].mxu0  ;;  %v777_v48 = vadd.f32 %v776_v33, %v2880_v57  ;;  %v971_v17 = vsel %vm790_vm0, %v3040_v55, 0.0  ;;  %v1046_v43 = vmul.f32 %v3040_v55, %v3040_v55 }
 0x172   :  { %3640 = vst [vmem:[#allocation4_spill] sm:$0xff] %v3026_v5  ;;  %v1856_v37 = vadd.f32 %v728_v47, %v2860_v13  ;;  %1109 = vadd.xlane.f32.xlu1 %v1108_v42  ;;  %v3049_v13 = vld [vmem:[%s3626_s3 + $0xa8] sm:$0xff]  ;;  %v1115_v38 = vsel %vm790_vm0, %v1062_v21, 0.0 }
 0x173   :  { %819 = vst.msk [vmem:[%s3626_s3 + $0xe8] sm:$0xff] %vm790_vm0, %v777_v48  ;;  %1105 = vadd.xlane.f32.xlu0 %v1104_v50  ;;  %v780_v12 = vpop.f32.mrb[46].mxu1  ;;  %v1060_v28 = vmul.f32 %v3049_v13, %v3049_v13  ;;  %v1083_v9 = vsel %vm790_vm0, %v1046_v43, 0.0  ;;  %v3107_v2 = vld [vmem:[%s3626_s3 + $0x48] sm:$0xff]  ;;  %v1116_v33 = vadd.f32 %v1115_v38, %v1061_v49 }
 0x174   :  { %803 = vst.msk [vmem:[%s3626_s3 + $0x68] sm:$0xff] %vm790_vm0, %v1856_v37  ;;  %v732_v57 = vpop.f32.mrb[14].mxu0  ;;  %v3056_v6 = vadd.f32 %v780_v12, %v2882_v61  ;;  %v782_v39 = vpop.f32.mrb[47].mxu1  ;;  %v999_v61 = vsel %vm790_vm0, %v3049_v13, 0.0  ;;  %v1084_v27 = vadd.f32 %v1083_v9, %v1045_v1  ;;  %v975_v10 = vsel %vm790_vm0, %v3107_v2, 0.0  ;;  %v3122_v51 = vld [vmem:[%s3626_s3 + $0xc8] sm:$0xff] }
 0x175   :  { %v3060_v58 = vadd.f32 %v732_v57, %v2862_v14  ;;  %v734_v59 = vpop.f32.mrb[15].mxu0  ;;  %v783_v60 = vadd.f32 %v782_v39, %v2884_v63  ;;  %v1044_v14 = vmul.f32 %v3013_v40, %v3013_v40  ;;  %v1000_v63 = vadd.f32 %v999_v61, %v2914_v35 }
 0x176   :  { %3641 = vst [vmem:[#allocation5_spill] sm:$0xff] %v3056_v6  ;;  %v1858_v20 = vadd.f32 %v734_v59, %v2864_v15  ;;  %969 = vadd.xlane.f32.xlu1 %v968_v54  ;;  %v972_v15 = vadd.f32 %v2944_v44, %v971_v17  ;;  %v1111_v34 = vsel %vm790_vm0, %v1060_v28, 0.0  ;;  %v976_v42 = vadd.f32 %v2979_v16, %v975_v10  ;;  %v3132_v50 = vld [vmem:[%s3626_s3 + $0xd8] sm:$0xff] }
 0x177   :  { %3642 = vst [vmem:[#allocation6_spill] sm:$0xff] %v3060_v58  ;;  %821 = vst.msk [vmem:[%s3626_s3 + $0xf8] sm:$0xff] %vm790_vm0, %v783_v60  ;;  %965 = vadd.xlane.f32.xlu0 %v964_v62  ;;  %v1079_v26 = vsel %vm790_vm0, %v1044_v14, 0.0  ;;  %v1112_v3 = vadd.f32 %v1111_v34, %v1059_v25  ;;  %v3117_v11 = vld [vmem:[%s3626_s3 + $0x58] sm:$0xff]  ;;  %v1007_v48 = vsel %vm790_vm0, %v3122_v51, 0.0  ;;  %v1048_v52 = vmul.f32 %v3107_v2, %v3107_v2 }
 0x178   :  { %805 = vst.msk [vmem:[%s3626_s3 + $0x78] sm:$0xff] %vm790_vm0, %v1858_v20  ;;  %v1080_v45 = vadd.f32 %v1079_v26, %v1043_v19  ;;  %3643 = vst [vmem:[#allocation7_spill] sm:$0xff] %v3117_v11  ;;  %v979_v47 = vsel %vm790_vm0, %v3117_v11, 0.0  ;;  %v1008_v53 = vadd.f32 %v1007_v48, %v2971_v56  ;;  %v1011_v12 = vsel %vm790_vm0, %v3132_v50, 0.0 }
 0x179   :  { %3644 = vst [vmem:[#allocation8_spill] sm:$0xff] %v3132_v50  ;;  %v980_v37 = vadd.f32 %v3002_v32, %v979_v47  ;;  %v1050_v57 = vmul.f32 %v3117_v11, %v3117_v11  ;;  %v1087_v39 = vsel %vm790_vm0, %v1048_v52, 0.0  ;;  %v1064_v54 = vmul.f32 %v3122_v51, %v3122_v51 }
 0x17a   :  { %973 = vadd.xlane.f32.xlu1 %v972_v15  ;;  %v1047_v59 = vmul.f32 %v2979_v16, %v2979_v16  ;;  %v1012_v60 = vadd.f32 %v1011_v12, %v2999_v0  ;;  %v1066_v20 = vmul.f32 %v3132_v50, %v3132_v50  ;;  %v1049_v61 = vmul.f32 %v3002_v32, %v3002_v32  ;;  %v3174_v9 = vld [vmem:[%s3626_s3 + $0xe8] sm:$0xff] }
 0x17b   :  { %1001 = vadd.xlane.f32.xlu0 %v1000_v63  ;;  %v1091_v17 = vsel %vm790_vm0, %v1050_v57, 0.0  ;;  %v1119_v14 = vsel %vm790_vm0, %v1064_v54, 0.0  ;;  %v1063_v15 = vmul.f32 %v2971_v56, %v2971_v56  ;;  %v3159_v63 = vld [vmem:[%s3626_s3 + $0x68] sm:$0xff]  ;;  %v1947_v28 = vmov 0   ;;  %3646 = vst [vmem:[#allocation10_spill] sm:$0xff] %v3174_v9 }
 0x17c   :  { %v1088_v62 = vadd.f32 %v1087_v39, %v1047_v59  ;;  %v1092_v24 = vadd.f32 %v1091_v17, %v1049_v61  ;;  %v1123_v26 = vsel %vm790_vm0, %v1066_v20, 0.0  ;;  %1910 = vset.pattern.permute.xlu0 %v1947_v28  ;;  %1911 = vset.pattern.permute.xlu1 %v1947_v28  ;;  %v1065_v19 = vmul.f32 %v2999_v0, %v2999_v0 }
 0x17d   :  { %v1120_v43 = vadd.f32 %v1119_v14, %v1063_v15  ;;  %v1015_v25 = vsel %vm790_vm0, %v3174_v9, 0.0  ;;  %v1068_v47 = vmul.f32 %v3174_v9, %v3174_v9  ;;  %v1051_v48 = vmul.f32 %v3029_v46, %v3029_v46 }
 0x17e   :  { %1005 = vadd.xlane.f32.xlu1 %v1004_v8  ;;  %v983_v8 = vsel %vm790_vm0, %v3159_v63, 0.0  ;;  %v1124_v21 = vadd.f32 %v1123_v26, %v1065_v19  ;;  %v1016_v49 = vadd.f32 %v1015_v25, %v3026_v5  ;;  %v1053_v39 = vmul.f32 %v3060_v58, %v3060_v58 }
 0x17f   :  { %1081 = vadd.xlane.f32.xlu0 %v1080_v45  ;;  %v3169_v45 = vld [vmem:[%s3626_s3 + $0x78] sm:$0xff]  ;;  %v984_v1 = vadd.f32 %v3029_v46, %v983_v8  ;;  %v1127_v57 = vsel %vm790_vm0, %v1068_v47, 0.0  ;;  %v1067_v54 = vmul.f32 %v3026_v5, %v3026_v5  ;;  %v1069_v17 = vmul.f32 %v3056_v6, %v3056_v6 }
 0x180   :  { %3645 = vst [vmem:[#allocation9_spill] sm:$0xff] %v3169_v45  ;;  %v987_v34 = vsel %vm790_vm0, %v3169_v45, 0.0 }
 0x181   :  { %v988_v38 = vadd.f32 %v3060_v58, %v987_v34 }
 0x182   :  { %1085 = vadd.xlane.f32.xlu1 %v1084_v27  ;;  %v1052_v27 = vmul.f32 %v3159_v63, %v3159_v63 }
 0x183   :  { %1113 = vadd.xlane.f32.xlu0 %v1112_v3  ;;  %v3186_v3 = vld [vmem:[%s3626_s3 + $0xf8] sm:$0xff] }
 0x184   :  { %3647 = vst [vmem:[#allocation11_spill] sm:$0xff] %v3186_v3  ;;  %v1019_v10 = vsel %vm790_vm0, %v3186_v3, 0.0  ;;  %v1070_v12 = vmul.f32 %v3186_v3, %v3186_v3 }
 0x185   :  { %v1020_v52 = vadd.f32 %v1019_v10, %v3056_v6 }
 0x186   :  { %1117 = vadd.xlane.f32.xlu1 %v1116_v33  ;;  %v1054_v33 = vmul.f32 %v3169_v45, %v3169_v45 }
 0x187   :  { %977 = vadd.xlane.f32.xlu0 %v976_v42  ;;  %v1095_v42 = vsel %vm790_vm0, %v1052_v27, 0.0 }
 0x18a   :  { %981 = vadd.xlane.f32.xlu1 %v980_v37  ;;  %v1096_v37 = vadd.f32 %v1095_v42, %v1051_v48 }
 0x18b   :  { %1009 = vadd.xlane.f32.xlu0 %v1008_v53  ;;  %v1099_v53 = vsel %vm790_vm0, %v1054_v33, 0.0 }
 0x18c   :  { %v1100_v59 = vadd.f32 %v1099_v53, %v1053_v39 }
 0x18e   :  { %1013 = vadd.xlane.f32.xlu1 %v1012_v60  ;;  %v1128_v60 = vadd.f32 %v1127_v57, %v1067_v54 }
 0x18f   :  { %1089 = vadd.xlane.f32.xlu0 %v1088_v62  ;;  %v1131_v62 = vsel %vm790_vm0, %v1070_v12, 0.0 }
 0x190   :  { %v1132_v20 = vadd.f32 %v1131_v62, %v1069_v17 }
 0x192   :  { %1093 = vadd.xlane.f32.xlu1 %v1092_v24 }
 0x193   :  { %1121 = vadd.xlane.f32.xlu0 %v1120_v43 }
 0x196   :  { %1125 = vadd.xlane.f32.xlu1 %v1124_v21 }
 0x197   :  { %985 = vadd.xlane.f32.xlu0 %v984_v1 }
 0x19a   :  { %989 = vadd.xlane.f32.xlu1 %v988_v38 }
 0x19b   :  { %1017 = vadd.xlane.f32.xlu0 %v1016_v49 }
 0x19e   :  { %1021 = vadd.xlane.f32.xlu1 %v1020_v52 }
 0x19f   :  { %1097 = vadd.xlane.f32.xlu0 %v1096_v37 }
 0x1a2   :  { %1101 = vadd.xlane.f32.xlu1 %v1100_v59 }
 0x1a3   :  { %1129 = vadd.xlane.f32.xlu0 %v1128_v60 }
 0x1a6   :  { %1133 = vadd.xlane.f32.xlu1 %v1132_v20 }
 0x1f4   :  { %v962_v61 = vpop.xlane.xlu0 %961 }
 0x1f5   :  { %v3211_v24 = vmul.f32 0.0051020407, %v962_v61 }
 0x1f7   :  { %v998_v14 = vpop.xlane.xlu1 %997  ;;  %v1151_v28 = vmul.f32 %v3211_v24, %v3211_v24 }
 0x1f8   :  { %v994_v15 = vpop.xlane.xlu0 %993  ;;  %v3217_v21 = vmul.f32 0.0051020407, %v998_v14 }
 0x1f9   :  { %v3215_v19 = vmul.f32 0.0051020407, %v994_v15 }
 0x1fa   :  { %v1160_v33 = vmul.f32 %v3217_v21, %v3217_v21 }
 0x1fb   :  { %v1078_v43 = vpop.xlane.xlu1 %1077  ;;  %v1159_v38 = vmul.f32 %v3215_v19, %v3215_v19 }
 0x1fc   :  { %v1074_v26 = vpop.xlane.xlu0 %1073  ;;  %v1136_v57 = vmul.f32 0.0051020407, %v1078_v43  ;;  %v3234_v43 = vld [vmem:[%s3627_s2] sm:$0xff] }
 0x1fd   :  { %v1135_v8 = vmul.f32 0.0051020407, %v1074_v26 }
 0x1ff   :  { %v1167_v1 = vsub.f32 %v1135_v8, %v1151_v28  ;;  %v1110_v34 = vpop.xlane.xlu1 %1109 }
 0x200   :  { %v1144_v25 = vmul.f32 0.0051020407, %v1110_v34  ;;  %v1106_v27 = vpop.xlane.xlu0 %1105 }
 0x201   :  { %v1183_v49 = vmax.f32 %v1167_v1, 0.0  ;;  %v1143_v10 = vmul.f32 0.0051020407, %v1106_v27 }
 0x202   :  { %v1176_v52 = vsub.f32 %v1144_v25, %v1160_v33 }
 0x203   :  { %v1215_v42 = vadd.f32 0.001, %v1183_v49  ;;  %v1175_v47 = vsub.f32 %v1143_v10, %v1159_v38  ;;  %v970_v48 = vpop.xlane.xlu1 %969 }
 0x204   :  { %v966_v37 = vpop.xlane.xlu0 %965  ;;  %v1192_v60 = vmax.f32 %v1176_v52, 0.0  ;;  %v3227_v17 = vmul.f32 0.0051020407, %v970_v48 }
 0x205   :  { %1914 = vrsqrt.f32 %v1215_v42  ;;  %v1191_v53 = vmax.f32 %v1175_v47, 0.0  ;;  %v3223_v12 = vmul.f32 0.0051020407, %v966_v37 }
 0x206   :  { %v1224_v15 = vadd.f32 0.001, %v1192_v60  ;;  %v1153_v8 = vmul.f32 %v3227_v17, %v3227_v17 }
 0x207   :  { %v1223_v39 = vadd.f32 0.001, %v1191_v53  ;;  %v1152_v54 = vmul.f32 %v3223_v12, %v3223_v12  ;;  %v974_v59 = vpop.xlane.xlu1 %973 }
 0x208   :  { %v1002_v62 = vpop.xlane.xlu0 %1001  ;;  %v3229_v26 = vmul.f32 0.0051020407, %v974_v59 }
 0x209   :  { %1916 = vrsqrt.f32 %v1223_v39  ;;  %v1168_v20 = vsub.f32 %v1136_v57, %v1152_v54  ;;  %v3238_v34 = vmul.f32 0.0051020407, %v1002_v62  ;;  %v3250_v57 = vld [vmem:[%s3627_s2 + $0x40] sm:$0xff] }
 0x20a   :  { %v1154_v33 = vmul.f32 %v3229_v26, %v3229_v26 }
 0x20b   :  { %v1184_v61 = vmax.f32 %v1168_v20, 0.0  ;;  %v1006_v14 = vpop.xlane.xlu1 %1005  ;;  %v1161_v52 = vmul.f32 %v3238_v34, %v3238_v34 }
 0x20c   :  { %v1082_v28 = vpop.xlane.xlu0 %1081  ;;  %v3240_v38 = vmul.f32 0.0051020407, %v1006_v14 }
 0x20d   :  { %v1216_v1 = vadd.f32 0.001, %v1184_v61  ;;  %v1137_v25 = vmul.f32 0.0051020407, %v1082_v28 }
 0x20e   :  { %v1162_v59 = vmul.f32 %v3240_v38, %v3240_v38 }
 0x20f   :  { %v1915_v27 = vpop.eup %1914  ;;  %1918 = vrsqrt.f32 %v1216_v1  ;;  %v1169_v49 = vsub.f32 %v1137_v25, %v1153_v8  ;;  %v1086_v10 = vpop.xlane.xlu1 %1085 }
 0x210   :  { %v1138_v42 = vmul.f32 0.0051020407, %v1086_v10  ;;  %v1114_v47 = vpop.xlane.xlu0 %1113  ;;  %v1247_v48 = vmul.f32 %v1915_v27, %v3234_v43  ;;  %1920 = vrsqrt.f32 %v1224_v15  ;;  %v3262_v27 = vld [vmem:[%s3627_s2 + $0x8] sm:$0xff] }
 0x211   :  { %v1185_v37 = vmax.f32 %v1169_v49, 0.0  ;;  %v1145_v53 = vmul.f32 0.0051020407, %v1114_v47 }
 0x212   :  { %v1170_v39 = vsub.f32 %v1138_v42, %v1154_v33  ;;  %1361 = vperm.xlu0 %1910, %v1247_v48   ;;  %v1263_v15 = vmul.f32 %v1247_v48, %v3211_v24 }
 0x213   :  { %v1917_v54 = vpop.eup %1916  ;;  %v1177_v60 = vsub.f32 %v1145_v53, %v1161_v52  ;;  %v1118_v62 = vpop.xlane.xlu1 %1117  ;;  %v1217_v20 = vadd.f32 0.001, %v1185_v37 }
 0x214   :  { %v1146_v61 = vmul.f32 0.0051020407, %v1118_v62  ;;  %v978_v14 = vpop.xlane.xlu0 %977  ;;  %v3256_v28 = vmul.f32 %v1917_v54, %v3250_v57  ;;  %v1186_v8 = vmax.f32 %v1170_v39, 0.0  ;;  %v3273_v54 = vld [vmem:[%s3627_s2 + $0x48] sm:$0xff] }
 0x215   :  { %v1193_v1 = vmax.f32 %v1177_v60, 0.0  ;;  %1922 = vrsqrt.f32 %v1217_v20  ;;  %v3264_v33 = vmul.f32 0.0051020407, %v978_v14 }
 0x216   :  { %v1178_v25 = vsub.f32 %v1146_v61, %v1162_v59  ;;  %1295 = vrot.lane.b32.xlu0 %v1263_v15, %s1948_s27  ;;  %v1271_v42 = vmul.f32 %v3256_v28, %v3215_v19  ;;  %v1218_v48 = vadd.f32 0.001, %v1186_v8 }
 0x217   :  { %v1225_v49 = vadd.f32 0.001, %v1193_v1  ;;  %v982_v10 = vpop.xlane.xlu1 %981  ;;  %v1155_v59 = vmul.f32 %v3264_v33, %v3264_v33 }
 0x218   :  { %v1010_v24 = vpop.xlane.xlu0 %1009  ;;  %v1194_v52 = vmax.f32 %v1178_v25, 0.0  ;;  %v3277_v60 = vmul.f32 0.0051020407, %v982_v10 }
 0x219   :  { %v1919_v47 = vpop.eup %1918  ;;  %1924 = vrsqrt.f32 %v1225_v49  ;;  %v3279_v20 = vmul.f32 0.0051020407, %v1010_v24 }
 0x21a   :  { %v1248_v37 = vmul.f32 %v1919_v47, %v3262_v27  ;;  %1311 = vrot.lane.b32.xlu0 %v1271_v42, %s1948_s27  ;;  %v1921_v53 = vpop.eup %1920  ;;  %1926 = vrsqrt.f32 %v1218_v48  ;;  %v1226_v62 = vadd.f32 0.001, %v1194_v52  ;;  %v1156_v25 = vmul.f32 %v3277_v60, %v3277_v60  ;;  %v3295_v48 = vld [vmem:[%s3627_s2 + $0x50] sm:$0xff] }
 0x21b   :  { %v1014_v39 = vpop.xlane.xlu1 %1013  ;;  %v3283_v15 = vmul.f32 %v1921_v53, %v3273_v54  ;;  %v1163_v24 = vmul.f32 %v3279_v20, %v3279_v20 }
 0x21c   :  { %v1090_v19 = vpop.xlane.xlu0 %1089  ;;  %1366 = vperm.xlu1 %1911, %v1248_v37   ;;  %v1264_v14 = vmul.f32 %v1248_v37, %v3223_v12  ;;  %v3287_v49 = vmul.f32 0.0051020407, %v1014_v39  ;;  %1928 = vrsqrt.f32 %v1226_v62  ;;  %v3302_v62 = vld [vmem:[%s3627_s2 + $0x10] sm:$0xff] }
 0x21d   :  { %v1139_v61 = vmul.f32 0.0051020407, %v1090_v19  ;;  %v1272_v53 = vmul.f32 %v3283_v15, %v3217_v21 }
 0x21f   :  { %v1171_v8 = vsub.f32 %v1139_v61, %v1155_v59  ;;  %v1094_v1 = vpop.xlane.xlu1 %1093  ;;  %v1923_v52 = vpop.eup %1922 }
 0x220   :  { %v1140_v10 = vmul.f32 0.0051020407, %v1094_v1  ;;  %v1122_v42 = vpop.xlane.xlu0 %1121  ;;  %1297 = vrot.lane.b32.xlu1 %v1264_v14, %s1948_s27  ;;  %v1164_v14 = vmul.f32 %v3287_v49, %v3287_v49 }
 0x221   :  { %v1187_v47 = vmax.f32 %v1171_v8, 0.0  ;;  %v1147_v12 = vmul.f32 0.0051020407, %v1122_v42 }
 0x222   :  { %v1172_v37 = vsub.f32 %v1140_v10, %v1156_v25 }
 0x223   :  { %v1925_v39 = vpop.eup %1924  ;;  %v1219_v59 = vadd.f32 0.001, %v1187_v47  ;;  %v1179_v19 = vsub.f32 %v1147_v12, %v1163_v24  ;;  %v1126_v61 = vpop.xlane.xlu1 %1125  ;;  %v1249_v12 = vmul.f32 %v1923_v52, %v3302_v62 }
 0x224   :  { %v1188_v8 = vmax.f32 %v1172_v37, 0.0  ;;  %v1148_v1 = vmul.f32 0.0051020407, %v1126_v61  ;;  %v986_v42 = vpop.xlane.xlu0 %985  ;;  %1313 = vrot.lane.b32.xlu1 %v1272_v53, %s1948_s27  ;;  %v3308_v25 = vmul.f32 %v1925_v39, %v3295_v48  ;;  %v1927_v3 = vpop.eup %1926  ;;  %v3316_v37 = vld [vmem:[%s3627_s2 + $0x18] sm:$0xff] }
 0x225   :  { %1930 = vrsqrt.f32 %v1219_v59  ;;  %v1195_v21 = vmax.f32 %v1179_v19, 0.0  ;;  %v3319_v59 = vmul.f32 0.0051020407, %v986_v42  ;;  %v1265_v52 = vmul.f32 %v1249_v12, %v3227_v17  ;;  %v3340_v42 = vld [vmem:[%s3627_s2 + $0x20] sm:$0xff] }
 0x226   :  { %v1220_v10 = vadd.f32 0.001, %v1188_v8  ;;  %v1180_v24 = vsub.f32 %v1148_v1, %v1164_v14  ;;  %v1273_v47 = vmul.f32 %v3308_v25, %v3238_v34  ;;  %v3323_v19 = vmul.f32 %v1927_v3, %v3316_v37  ;;  %v1929_v61 = vpop.eup %1928  ;;  %v3328_v8 = vld [vmem:[%s3627_s2 + $0x58] sm:$0xff] }
 0x227   :  { %v1227_v6 = vadd.f32 0.001, %v1195_v21  ;;  %v990_v45 = vpop.xlane.xlu1 %989 }
 0x228   :  { %1932 = vrsqrt.f32 %v1220_v10  ;;  %v1196_v53 = vmax.f32 %v1180_v24, 0.0  ;;  %1315 = vrot.lane.b32.xlu0 %v1273_v47, %s1948_s27  ;;  %v1018_v39 = vpop.xlane.xlu0 %1017  ;;  %1371 = vperm.xlu1 %1911, %v1249_v12   ;;  %v3330_v1 = vmul.f32 0.0051020407, %v990_v45  ;;  %v1266_v10 = vmul.f32 %v3323_v19, %v3229_v26  ;;  %v3354_v26 = vld [vmem:[%s3627_s2 + $0x28] sm:$0xff] }
 0x229   :  { %1934 = vrsqrt.f32 %v1227_v6  ;;  %v1157_v6 = vmul.f32 %v3319_v59, %v3319_v59  ;;  %v3335_v17 = vmul.f32 0.0051020407, %v1018_v39  ;;  %v3345_v45 = vmul.f32 %v1929_v61, %v3328_v8 }
 0x22a   :  { %v1228_v34 = vadd.f32 0.001, %v1196_v53  ;;  %v1158_v53 = vmul.f32 %v3330_v1, %v3330_v1 }
 0x22b   :  { %v1022_v14 = vpop.xlane.xlu1 %1021  ;;  %v1165_v61 = vmul.f32 %v3335_v17, %v3335_v17 }
 0x22c   :  { %1936 = vrsqrt.f32 %v1228_v34  ;;  %v1098_v21 = vpop.xlane.xlu0 %1097  ;;  %1299 = vrot.lane.b32.xlu1 %v1265_v52, %s1948_s27  ;;  %v1038_v39 = vmul.f32 0.0051020407, %v1022_v14  ;;  %v3361_v14 = vld [vmem:[%s3627_s2 + $0x60] sm:$0xff] }
 0x22d   :  { %v1141_v3 = vmul.f32 0.0051020407, %v1098_v21 }
 0x22f   :  { %v1931_v24 = vpop.eup %1930  ;;  %v1173_v47 = vsub.f32 %v1141_v3, %v1157_v6  ;;  %v1102_v12 = vpop.xlane.xlu1 %1101 }
 0x230   :  { %v1130_v34 = vpop.xlane.xlu0 %1129  ;;  %1301 = vrot.lane.b32.xlu1 %v1266_v10, %s1948_s27  ;;  %v1142_v52 = vmul.f32 0.0051020407, %v1102_v12  ;;  %v1251_v21 = vmul.f32 %v1931_v24, %v3340_v42  ;;  %v1274_v24 = vmul.f32 %v3345_v45, %v3240_v38 }
 0x231   :  { %v1189_v6 = vmax.f32 %v1173_v47, 0.0  ;;  %v1149_v3 = vmul.f32 0.0051020407, %v1130_v34  ;;  %v1166_v47 = vmul.f32 %v1038_v39, %v1038_v39 }
 0x232   :  { %v1933_v58 = vpop.eup %1932  ;;  %v1174_v10 = vsub.f32 %v1142_v52, %v1158_v53  ;;  %v1267_v12 = vmul.f32 %v1251_v21, %v3264_v33  ;;  %v3373_v33 = vld [vmem:[%s3627_s2 + $0x68] sm:$0xff] }
 0x233   :  { %v1935_v50 = vpop.eup %1934  ;;  %v1221_v0 = vadd.f32 0.001, %v1189_v6  ;;  %v1181_v9 = vsub.f32 %v1149_v3, %v1165_v61  ;;  %v1134_v5 = vpop.xlane.xlu1 %1133  ;;  %v1252_v11 = vmul.f32 %v1933_v58, %v3354_v26 }
 0x234   :  { %v1190_v34 = vmax.f32 %v1174_v10, 0.0  ;;  %1303 = vrot.lane.b32.xlu0 %v1267_v12, %s1948_s27  ;;  %1317 = vrot.lane.b32.xlu1 %v1274_v24, %s1948_s27  ;;  %v1150_v32 = vmul.f32 0.0051020407, %v1134_v5  ;;  %v1259_v53 = vmul.f32 %v1935_v50, %v3361_v14 }
 0x235   :  { %1938 = vrsqrt.f32 %v1221_v0  ;;  %v1197_v38 = vmax.f32 %v1181_v9, 0.0  ;;  %v1268_v52 = vmul.f32 %v1252_v11, %v3277_v60 }
 0x236   :  { %v1937_v61 = vpop.eup %1936  ;;  %v1222_v58 = vadd.f32 0.001, %v1190_v34  ;;  %v1182_v6 = vsub.f32 %v1150_v32, %v1166_v47  ;;  %v1275_v3 = vmul.f32 %v1259_v53, %v3279_v20  ;;  %v3385_v32 = vld [vmem:[%s3627_s2 + $0x30] sm:$0xff]  ;;  %v3391_v20 = vld [vmem:[%s3627_s2 + $0x38] sm:$0xff] }
 0x237   :  { %v1229_v10 = vadd.f32 0.001, %v1197_v38  ;;  %v1260_v12 = vmul.f32 %v1937_v61, %v3373_v33  ;;  %v3405_v61 = vld [vmem:[%s3627_s2 + $0x78] sm:$0xff] }
 0x238   :  { %1940 = vrsqrt.f32 %v1222_v58  ;;  %v1198_v5 = vmax.f32 %v1182_v6, 0.0  ;;  %1319 = vrot.lane.b32.xlu0 %v1275_v3, %s1948_s27  ;;  %1305 = vrot.lane.b32.xlu1 %v1268_v52, %s1948_s27 }
 0x239   :  { %1942 = vrsqrt.f32 %v1229_v10  ;;  %v1276_v0 = vmul.f32 %v1260_v12, %v3287_v49  ;;  %v3396_v49 = vld [vmem:[%s3627_s2 + $0x70] sm:$0xff] }
 0x23a   :  { %v1230_v50 = vadd.f32 0.001, %v1198_v5 }
 0x23c   :  { %1944 = vrsqrt.f32 %v1230_v50  ;;  %1321 = vrot.lane.b32.xlu1 %v1276_v0, %s1948_s27 }
 0x23f   :  { %v1939_v9 = vpop.eup %1938 }
 0x240   :  { %v1253_v60 = vmul.f32 %v1939_v9, %v3385_v32 }
 0x242   :  { %v1941_v24 = vpop.eup %1940  ;;  %v1269_v47 = vmul.f32 %v1253_v60, %v3319_v59 }
 0x243   :  { %v1943_v34 = vpop.eup %1942  ;;  %v1254_v38 = vmul.f32 %v1941_v24, %v3391_v20 }
 0x244   :  { %1307 = vrot.lane.b32.xlu0 %v1269_v47, %s1948_s27  ;;  %v1261_v52 = vmul.f32 %v1943_v34, %v3396_v49 }
 0x245   :  { %v1270_v58 = vmul.f32 %v1254_v38, %v3330_v1  ;;  %v1949_v1 = vmov 1  }
 0x246   :  { %v1945_v6 = vpop.eup %1944  ;;  %v1277_v3 = vmul.f32 %v1261_v52, %v3335_v17 }
 0x247   :  { %1309 = vrot.lane.b32.xlu1 %v1270_v58, %s1948_s27  ;;  %v1262_v59 = vmul.f32 %v1945_v6, %v3405_v61 }
 0x248   :  { %1323 = vrot.lane.b32.xlu0 %v1277_v3, %s1948_s27 }
 0x249   :  { %v1278_v10 = vmul.f32 %v1262_v59, %v1038_v39 }
 0x24b   :  { %1325 = vrot.lane.b32.xlu1 %v1278_v10, %s1948_s27 }
 0x24c   :  { %1376 = vperm.xlu0 %1910, %v3323_v19  }
 0x24f   :  { %1381 = vperm.xlu1 %1911, %v1251_v21  }
 0x250   :  { %1386 = vperm.xlu0 %1910, %v1252_v11  }
 0x253   :  { %1391 = vperm.xlu1 %1911, %v1253_v60  }
 0x254   :  { %1396 = vperm.xlu0 %1910, %v1254_v38  }
 0x257   :  { %1401 = vperm.xlu1 %1911, %v3256_v28  }
 0x258   :  { %1406 = vperm.xlu0 %1910, %v3283_v15  }
 0x25b   :  { %1411 = vperm.xlu1 %1911, %v3308_v25  }
 0x25c   :  { %1416 = vperm.xlu0 %1910, %v3345_v45  }
 0x25f   :  { %1421 = vperm.xlu1 %1911, %v1259_v53  }
 0x260   :  { %1426 = vperm.xlu0 %1910, %v1260_v12  }
 0x263   :  { %1431 = vperm.xlu1 %1911, %v1261_v52  }
 0x264   :  { %1436 = vperm.xlu0 %1910, %v1262_v59  }
 0x267   :  { %1912 = vset.pattern.permute.xlu1 %v1949_v1 }
 0x268   :  { %1913 = vset.pattern.permute.xlu0 %v1949_v1 }
 0x291   :  { %v3418_v19 = vpop.permute.xlu0 %1361 }
 0x295   :  { %v1296_v11 = vpop.permute.xlu0 %1295 }
 0x296   :  { %v1343_v17 = vsub.f32 %v3234_v43, %v1296_v11 }
 0x298   :  { %1473 = vperm.xlu1 %1912, %v1343_v17  }
 0x299   :  { %v1312_v28 = vpop.permute.xlu0 %1311 }
 0x29a   :  { %v1351_v15 = vsub.f32 %v3250_v57, %v1312_v28 }
 0x29b   :  { %v3422_v39 = vpop.permute.xlu1 %1366 }
 0x29c   :  { %1513 = vperm.xlu0 %1913, %v1351_v15  }
 0x29d   :  { %v1316_v21 = vpop.permute.xlu0 %1315 }
 0x29e   :  { %v1353_v12 = vsub.f32 %v3295_v48, %v1316_v21 }
 0x29f   :  { %v1298_v25 = vpop.permute.xlu1 %1297 }
 0x2a0   :  { %v1344_v45 = vsub.f32 %v3262_v27, %v1298_v25 }
 0x2a2   :  { %1478 = vperm.xlu0 %1913, %v1344_v45   ;;  %v1440_v45 = vmul.f32 %v3418_v19, %v2927_v41 }
 0x2a3   :  { %v1314_v53 = vpop.permute.xlu1 %1313 }
 0x2a4   :  { %v1352_v5 = vsub.f32 %v3273_v54, %v1314_v53 }
 0x2a6   :  { %v1304_v0 = vpop.permute.xlu0 %1303  ;;  %1523 = vperm.xlu0 %1913, %v1353_v12   ;;  %1518 = vperm.xlu1 %1912, %v1352_v5  }
 0x2a7   :  { %v1347_v43 = vsub.f32 %v3340_v42, %v1304_v0  ;;  %v3428_v50 = vpop.permute.xlu1 %1371 }
 0x2aa   :  { %v1320_v57 = vpop.permute.xlu0 %1319  ;;  %1493 = vperm.xlu0 %1913, %v1347_v43  }
 0x2ab   :  { %v1355_v9 = vsub.f32 %v3361_v14, %v1320_v57  ;;  %v1300_v60 = vpop.permute.xlu1 %1299 }
 0x2ac   :  { %v1345_v27 = vsub.f32 %v3302_v62, %v1300_v60 }
 0x2ae   :  { %1533 = vperm.xlu0 %1913, %v1355_v9   ;;  %1483 = vperm.xlu1 %1912, %v1345_v27  }
 0x2af   :  { %v1302_v24 = vpop.permute.xlu1 %1301 }
 0x2b0   :  { %v1346_v48 = vsub.f32 %v3316_v37, %v1302_v24  ;;  %v1946_v24 = vld [vmem:[%s3626_s3 + $0x98] sm:$0xff] }
 0x2b2   :  { %1488 = vperm.xlu1 %1912, %v1346_v48  }
 0x2b3   :  { %v1318_v54 = vpop.permute.xlu1 %1317 }
 0x2b4   :  { %v1354_v47 = vsub.f32 %v3328_v8, %v1318_v54 }
 0x2b6   :  { %v1308_v34 = vpop.permute.xlu0 %1307  ;;  %1528 = vperm.xlu1 %1912, %v1354_v47  }
 0x2b7   :  { %v1349_v42 = vsub.f32 %v3385_v32, %v1308_v34  ;;  %v1306_v38 = vpop.permute.xlu1 %1305 }
 0x2b8   :  { %v1348_v52 = vsub.f32 %v3354_v26, %v1306_v38 }
 0x2b9   :  { %1503 = vperm.xlu0 %1913, %v1349_v42  }
 0x2ba   :  { %v1324_v14 = vpop.permute.xlu0 %1323  ;;  %1498 = vperm.xlu1 %1912, %v1348_v52   ;;  %v1443_v52 = vmul.f32 %v2917_v36, %v3428_v50 }
 0x2bb   :  { %v1357_v62 = vsub.f32 %v3396_v49, %v1324_v14  ;;  %v1322_v58 = vpop.permute.xlu1 %1321  ;;  %v1444_v14 = vmul.f32 %v3428_v50, %v3013_v40 }
 0x2bc   :  { %v1356_v6 = vsub.f32 %v3373_v33, %v1322_v58 }
 0x2bd   :  { %1543 = vperm.xlu0 %1913, %v1357_v62  }
 0x2be   :  { %1538 = vperm.xlu1 %1912, %v1356_v6  }
 0x2bf   :  { %v1310_v37 = vpop.permute.xlu1 %1309 }
 0x2c0   :  { %v1350_v8 = vsub.f32 %v3391_v20, %v1310_v37 }
 0x2c2   :  { %1508 = vperm.xlu1 %1912, %v1350_v8  }
 0x2c3   :  { %v1326_v3 = vpop.permute.xlu1 %1325 }
 0x2c4   :  { %v1358_v32 = vsub.f32 %v3405_v61, %v1326_v3  ;;  %v1439_v61 = vmul.f32 %v2889_v22, %v3418_v19 }
 0x2c6   :  { %1548 = vperm.xlu1 %1912, %v1358_v32  }
 0x2cb   :  { %v3440_v59 = vpop.permute.xlu0 %1376 }
 0x2cc   :  { %v1446_v40 = vmul.f32 %v3440_v59, %v3040_v55 }
 0x2ce   :  { %v1382_v26 = vpop.permute.xlu1 %1381 }
 0x2cf   :  { %v3442_v10 = vpop.permute.xlu0 %1386  ;;  %v1447_v38 = vmul.f32 %v2979_v16, %v1382_v26 }
 0x2d2   :  { %v3444_v1 = vpop.permute.xlu1 %1391 }
 0x2d3   :  { %v3446_v49 = vpop.permute.xlu0 %1396 }
 0x2d6   :  { %v1402_v33 = vpop.permute.xlu1 %1401 }
 0x2d7   :  { %v1407_v11 = vpop.permute.xlu0 %1406  ;;  %v1455_v0 = vmul.f32 %v1402_v33, %v2886_v18  ;;  %v1456_v43 = vmul.f32 %v1402_v33, %v2932_v4  ;;  %v1441_v18 = vmul.f32 %v2903_v30, %v3422_v39  ;;  %v1442_v4 = vmul.f32 %v3422_v39, %v2964_v7 }
 0x2d8   :  { %v1457_v27 = vmul.f32 %v1407_v11, %v2900_v29  ;;  %v1458_v48 = vmul.f32 %v1946_v24, %v1407_v11 }
 0x2da   :  { %v1412_v17 = vpop.permute.xlu1 %1411 }
 0x2db   :  { %v3448_v28 = vpop.permute.xlu0 %1416  ;;  %v1459_v54 = vmul.f32 %v1412_v17, %v2914_v35  ;;  %v1460_v47 = vmul.f32 %v1412_v17, %v3049_v13  ;;  %v1448_v35 = vmul.f32 %v1382_v26, %v3107_v2  ;;  %v1451_v17 = vmul.f32 %v3029_v46, %v3444_v1 }
 0x2dc   :  { %v1461_v50 = vmul.f32 %v3448_v28, %v2939_v31  ;;  %v1452_v31 = vmul.f32 %v3444_v1, %v3159_v63 }
 0x2de   :  { %v1422_v20 = vpop.permute.xlu1 %1421 }
 0x2df   :  { %v3450_v15 = vpop.permute.xlu0 %1426  ;;  %v1463_v62 = vmul.f32 %v1422_v20, %v2971_v56  ;;  %v1464_v58 = vmul.f32 %v1422_v20, %v3122_v51  ;;  %v1445_v56 = vmul.f32 %v2944_v44, %v3440_v59  ;;  %v1462_v59 = vmul.f32 %v3448_v28, %v3072_v23  ;;  %v3648_v23 = vld [vmem:[#allocation3_spill] sm:$0xff] }
 0x2e0   :  { %v1449_v28 = vmul.f32 %v3648_v23, %v3442_v10  ;;  %v3649_v20 = vld [vmem:[#allocation7_spill] sm:$0xff] }
 0x2e2   :  { %v3452_v25 = vpop.permute.xlu1 %1431 }
 0x2e3   :  { %v3458_v21 = vpop.permute.xlu0 %1436 }
 0x317   :  { %v1474_v53 = vpop.permute.xlu1 %1473 }
 0x318   :  { %v1551_v12 = vadd.f32 %v1474_v53, %v1439_v61  ;;  %v1552_v5 = vadd.f32 %v1474_v53, %v1440_v45  ;;  %v1450_v61 = vmul.f32 %v3442_v10, %v3649_v20 }
 0x31a   :  { %1583 = vst [vmem:[%s3626_s3] sm:$0xff] %v1551_v12  ;;  %1584 = vst.msk [vmem:[%s3626_s3 + $0x8] sm:$0xff] %vm790_vm0, %v1552_v5  ;;  %v3650_v5 = vld [vmem:[#allocation4_spill] sm:$0xff] }
 0x31b   :  { %v1514_v22 = vpop.permute.xlu0 %1513 }
 0x31c   :  { %v1567_v41 = vadd.f32 %v1514_v22, %v1455_v0  ;;  %v1568_v19 = vadd.f32 %v1514_v22, %v1456_v43  ;;  %v1467_v0 = vmul.f32 %v3452_v25, %v3650_v5  ;;  %v3651_v43 = vld [vmem:[#allocation10_spill] sm:$0xff] }
 0x31d   :  { %v1468_v10 = vmul.f32 %v3452_v25, %v3651_v43  ;;  %v3652_v22 = vld [vmem:[#allocation2_spill] sm:$0xff] }
 0x31e   :  { %1599 = vst [vmem:[%s3626_s3 + $0x80] sm:$0xff] %v1567_v41  ;;  %1600 = vst.msk [vmem:[%s3626_s3 + $0x88] sm:$0xff] %vm790_vm0, %v1568_v19  ;;  %v1465_v41 = vmul.f32 %v3450_v15, %v3652_v22  ;;  %v3653_v19 = vld [vmem:[#allocation8_spill] sm:$0xff] }
 0x321   :  { %v1479_v57 = vpop.permute.xlu0 %1478 }
 0x322   :  { %v1553_v9 = vadd.f32 %v1479_v57, %v1441_v18  ;;  %v1554_v60 = vadd.f32 %v1479_v57, %v1442_v4  ;;  %v1466_v18 = vmul.f32 %v3450_v15, %v3653_v19  ;;  %v3654_v15 = vld [vmem:[#allocation6_spill] sm:$0xff] }
 0x323   :  { %v1453_v24 = vmul.f32 %v3654_v15, %v3446_v49 }
 0x324   :  { %1585 = vst [vmem:[%s3626_s3 + $0x10] sm:$0xff] %v1553_v9  ;;  %1586 = vst.msk [vmem:[%s3626_s3 + $0x18] sm:$0xff] %vm790_vm0, %v1554_v60 }
 0x325   :  { %v1524_v30 = vpop.permute.xlu0 %1523  ;;  %v1519_v29 = vpop.permute.xlu1 %1518 }
 0x326   :  { %v1571_v7 = vadd.f32 %v1524_v30, %v1459_v54  ;;  %v1572_v39 = vadd.f32 %v1524_v30, %v1460_v47  ;;  %v1569_v34 = vadd.f32 %v1519_v29, %v1457_v27  ;;  %v1570_v42 = vadd.f32 %v1519_v29, %v1458_v48  ;;  %v3655_v48 = vld [vmem:[#allocation9_spill] sm:$0xff] }
 0x327   :  { %v1454_v54 = vmul.f32 %v3446_v49, %v3655_v48 }
 0x328   :  { %1603 = vst [vmem:[%s3626_s3 + $0xa0] sm:$0xff] %v1571_v7  ;;  %1604 = vst.msk [vmem:[%s3626_s3 + $0xa8] sm:$0xff] %vm790_vm0, %v1572_v39  ;;  %v3656_v7 = vld [vmem:[#allocation5_spill] sm:$0xff] }
 0x329   :  { %1601 = vst [vmem:[%s3626_s3 + $0x90] sm:$0xff] %v1569_v34  ;;  %1602 = vst.msk [vmem:[%s3626_s3 + $0x98] sm:$0xff] %vm790_vm0, %v1570_v42  ;;  %v1494_v16 = vpop.permute.xlu0 %1493  ;;  %v1469_v39 = vmul.f32 %v3458_v21, %v3656_v7  ;;  %v3657_v34 = vld [vmem:[#allocation11_spill] sm:$0xff] }
 0x32a   :  { %v1559_v13 = vadd.f32 %v1494_v16, %v1447_v38  ;;  %v1560_v2 = vadd.f32 %v1494_v16, %v1448_v35  ;;  %v1470_v42 = vmul.f32 %v3458_v21, %v3657_v34 }
 0x32c   :  { %1591 = vst [vmem:[%s3626_s3 + $0x40] sm:$0xff] %v1559_v13  ;;  %1592 = vst.msk [vmem:[%s3626_s3 + $0x48] sm:$0xff] %vm790_vm0, %v1560_v2 }
 0x32d   :  { %v1534_v6 = vpop.permute.xlu0 %1533  ;;  %v1484_v37 = vpop.permute.xlu1 %1483 }
 0x32e   :  { %v1575_v8 = vadd.f32 %v1534_v6, %v1463_v62  ;;  %v1576_v36 = vadd.f32 %v1534_v6, %v1464_v58  ;;  %v1555_v3 = vadd.f32 %v1484_v37, %v1443_v52  ;;  %v1556_v32 = vadd.f32 %v1484_v37, %v1444_v14 }
 0x330   :  { %1607 = vst [vmem:[%s3626_s3 + $0xc0] sm:$0xff] %v1575_v8  ;;  %1608 = vst.msk [vmem:[%s3626_s3 + $0xc8] sm:$0xff] %vm790_vm0, %v1576_v36 }
 0x331   :  { %1587 = vst [vmem:[%s3626_s3 + $0x20] sm:$0xff] %v1555_v3  ;;  %1588 = vst.msk [vmem:[%s3626_s3 + $0x28] sm:$0xff] %vm790_vm0, %v1556_v32  ;;  %v1489_v44 = vpop.permute.xlu1 %1488 }
 0x332   :  { %v1557_v55 = vadd.f32 %v1489_v44, %v1445_v56  ;;  %v1558_v51 = vadd.f32 %v1489_v44, %v1446_v40 }
 0x334   :  { %1589 = vst [vmem:[%s3626_s3 + $0x30] sm:$0xff] %v1557_v55  ;;  %1590 = vst.msk [vmem:[%s3626_s3 + $0x38] sm:$0xff] %vm790_vm0, %v1558_v51 }
 0x335   :  { %v1529_v26 = vpop.permute.xlu1 %1528 }
 0x336   :  { %v1573_v33 = vadd.f32 %v1529_v26, %v1461_v50  ;;  %v1574_v11 = vadd.f32 %v1529_v26, %v1462_v59 }
 0x338   :  { %1605 = vst [vmem:[%s3626_s3 + $0xb0] sm:$0xff] %v1573_v33  ;;  %1606 = vst.msk [vmem:[%s3626_s3 + $0xb8] sm:$0xff] %vm790_vm0, %v1574_v11  ;;  %v1504_v45 = vpop.permute.xlu0 %1503 }
 0x339   :  { %v1563_v46 = vadd.f32 %v1504_v45, %v1451_v17  ;;  %v1564_v53 = vadd.f32 %v1504_v45, %v1452_v31  ;;  %v1499_v12 = vpop.permute.xlu1 %1498 }
 0x33a   :  { %v1561_v63 = vadd.f32 %v1499_v12, %v1449_v28  ;;  %v1562_v1 = vadd.f32 %v1499_v12, %v1450_v61 }
 0x33b   :  { %1595 = vst [vmem:[%s3626_s3 + $0x60] sm:$0xff] %v1563_v46  ;;  %1596 = vst.msk [vmem:[%s3626_s3 + $0x68] sm:$0xff] %vm790_vm0, %v1564_v53 }
 0x33c   :  { %1593 = vst [vmem:[%s3626_s3 + $0x50] sm:$0xff] %v1561_v63  ;;  %1594 = vst.msk [vmem:[%s3626_s3 + $0x58] sm:$0xff] %vm790_vm0, %v1562_v1  ;;  %v1544_v25 = vpop.permute.xlu0 %1543 }
 0x33d   :  { %v1579_v4 = vadd.f32 %v1544_v25, %v1467_v0  ;;  %v1580_v57 = vadd.f32 %v1544_v25, %v1468_v10  ;;  %v1539_v9 = vpop.permute.xlu1 %1538 }
 0x33e   :  { %v1577_v60 = vadd.f32 %v1539_v9, %v1465_v41  ;;  %v1578_v27 = vadd.f32 %v1539_v9, %v1466_v18 }
 0x33f   :  { %1611 = vst [vmem:[%s3626_s3 + $0xe0] sm:$0xff] %v1579_v4  ;;  %1612 = vst.msk [vmem:[%s3626_s3 + $0xe8] sm:$0xff] %vm790_vm0, %v1580_v57 }
 0x340   :  { %1609 = vst [vmem:[%s3626_s3 + $0xd0] sm:$0xff] %v1577_v60  ;;  %1610 = vst.msk [vmem:[%s3626_s3 + $0xd8] sm:$0xff] %vm790_vm0, %v1578_v27 }
 0x341   :  { %v1509_v47 = vpop.permute.xlu1 %1508 }
 0x342   :  { %v1565_v30 = vadd.f32 %v1509_v47, %v1453_v24  ;;  %v1566_v29 = vadd.f32 %v1509_v47, %v1454_v54 }
 0x344   :  { %1597 = vst [vmem:[%s3626_s3 + $0x70] sm:$0xff] %v1565_v30  ;;  %1598 = vst.msk [vmem:[%s3626_s3 + $0x78] sm:$0xff] %vm790_vm0, %v1566_v29 }
 0x345   :  { %v1549_v49 = vpop.permute.xlu1 %1548 }
 0x346   :  { %v1581_v38 = vadd.f32 %v1549_v49, %v1469_v39  ;;  %v1582_v35 = vadd.f32 %v1549_v49, %v1470_v42 }
 0x348   :  { %1613 = vst [vmem:[%s3626_s3 + $0xf0] sm:$0xff] %v1581_v38  ;;  %1614 = vst.msk [vmem:[%s3626_s3 + $0xf8] sm:$0xff] %vm790_vm0, %v1582_v35 }

</bundles_post_ra>
